<compile_context>
chip_gen: v6e
topology: v6e:2x2x1
jax: 0.10.0
libtpu: 0.0.40
codegen_flags: <defaults>
</compile_context>

<pallas_src>
import jax
import jax.numpy as jnp
from jax.experimental import pallas as pl
from jax.experimental.pallas import tpu as pltpu

INPUT_SIZE = 4
HIDDEN_SIZE = 64
NUM_LAYERS = 2  # layers are unrolled explicitly in the kernel (input widths differ)


def _gate_combine(gates, c, H):
    """PyTorch LSTM gate combine, gate order (i, f, g, o).

    One sigmoid over the full (B, 4H) gate tensor (single wide EUP pass),
    one tanh on the g slice, then the elementwise cell update. All f32.
    """
    sg = jax.nn.sigmoid(gates)
    i = sg[:, 0 * H:1 * H]
    f = sg[:, 1 * H:2 * H]
    o = sg[:, 3 * H:4 * H]
    g = jnp.tanh(gates[:, 2 * H:3 * H])
    c_new = f * c + i * g
    h_new = o * jnp.tanh(c_new)
    return h_new, c_new


def lstm_model_kernel(x_ref,                 # (T*B, I)   f32, time-major
                      wih0_ref,              # (I, 4H)    bf16
                      b0_ref,                # (1, 4H)    f32   (b_ih0 + b_hh0)
                      wcat_ref,              # (2H, 8H)   bf16  fused [[wih1,whh0],[whh1,0]]
                      b1_ref,                # (1, 4H)    f32   (b_ih1 + b_hh1)
                      wfc_ref, bfc_ref,      # (1, H) f32, (1, 1) f32
                      out_ref):              # (B, 1)     f32
    B = out_ref.shape[0]
    T = x_ref.shape[0] // B
    G = b0_ref.shape[1]          # 4H
    H = G // 4

    # Hoist the layer-1 bias broadcast out of the unrolled loop.
    b1_full = jnp.broadcast_to(b1_ref[...], (B, G))

    # ---- hoisted layer-0 input projection: one well-shaped (T*B, I)@(I, 4H) matmul ----
    # Reshape once to (T, B, 4H) so the per-step read is an aligned leading-axis index
    # (no per-step sublane-crossing row slice on the critical path).
    x_bf16 = x_ref[...].astype(jnp.bfloat16)
    gx0 = (jnp.dot(x_bf16, wih0_ref[...], preferred_element_type=jnp.float32)
           + b0_ref[...]).reshape(T, B, G)

    h0 = jnp.zeros((B, H), jnp.float32)
    c0 = jnp.zeros((B, H), jnp.float32)
    h1 = jnp.zeros((B, H), jnp.float32)
    c1 = jnp.zeros((B, H), jnp.float32)

    # ---- step 0: layer-0 only; h0 == 0 so the recurrent MXU term vanishes -------------
    h0, c0 = _gate_combine(gx0[0], c0, H)

    # ---- wavefront over the two layers, ONE fused recurrent matmul per iteration ------
    # Iteration t (1..T): layer-1 advances to step t-1, layer-0 advances to step t.
    # Both cells consume the *pre-iteration* h0/h1, so a single
    #   [h0 | h1] @ [[wih1_t, whh0_t], [whh1_t, 0]]
    # matmul yields the layer-1 pre-bias gates (first 4H lanes, vreg-aligned slice) and
    # the layer-0 recurrent term h0 @ whh0_t (last 4H lanes) in one MXU push/pop.
    # T is a small trace-time constant, so a Python-unrolled loop is fine here.
    for t in range(1, T + 1):
        h_cat = jnp.concatenate([h0, h1], axis=-1).astype(jnp.bfloat16)   # (B, 2H)
        # Read the fused weight from its ref inside the loop (don't pin ~32 vregs of
        # weights across the whole unrolled recurrence).
        gcat = jnp.dot(h_cat, wcat_ref[...],
                       preferred_element_type=jnp.float32)                # (B, 8H)

        # layer-1, step t-1 (input is h0 from step t-1, recurrent h is h1 from step t-2)
        g1 = gcat[:, :G] + b1_full
        h1_new, c1_new = _gate_combine(g1, c1, H)

        # layer-0, step t (recurrent input is h0 from step t-1); skipped at t == T
        if t < T:
            g0 = gx0[t] + gcat[:, G:]
            h0, c0 = _gate_combine(g0, c0, H)

        h1, c1 = h1_new, c1_new

    # ---- fc(out[:, -1, :]) + sigmoid: VPU multiply + lane reduce, no MXU round-trip ----
    logits = jnp.sum(h1 * wfc_ref[...], axis=-1, keepdims=True) + bfc_ref[...]
    out_ref[...] = jax.nn.sigmoid(logits)


def lstm_model_forward(x, params):
    """x: (B, T, I) batch-first f32, matching the PyTorch module's forward().

    Weight casts / fusion are one-time work done in init_params; only the
    input-dependent layout plumbing (time-major flatten) happens per call.
    """
    B, T, I = x.shape
    x_tb = jnp.transpose(x, (1, 0, 2)).reshape(T * B, I)

    vmem = pl.BlockSpec(memory_space=pltpu.MemorySpace.VMEM)
    return pl.pallas_call(
        lstm_model_kernel,
        out_shape=jax.ShapeDtypeStruct((B, 1), jnp.float32),
        in_specs=[vmem] * 7,
        out_specs=vmem,
    )(x_tb,
      params["wih0_bf16"], params["b0"],
      params["wcat_bf16"], params["b1"],
      params["wfc_row"], params["bfc"])


def init_params(key, input_size=INPUT_SIZE, hidden_size=HIDDEN_SIZE):
    """Deterministic synthetic params, PyTorch-style uniform(-1/sqrt(H), 1/sqrt(H)).

    Also performs the ONE-TIME kernel prep: bf16 casts of the MXU operands and the
    fused (2H, 8H) recurrent weight block used by the wavefront step.
    """
    H = hidden_size
    G = 4 * H
    bound = 1.0 / jnp.sqrt(jnp.float32(H))
    keys = jax.random.split(key, 12)

    def u(k, shape):
        return jax.random.uniform(k, shape, jnp.float32, -bound, bound)

    # torch shapes: w_ih_l0 (4H, I), w_hh_l0 (4H, H), w_ih_l1 (4H, H), w_hh_l1 (4H, H)
    w_ih0 = u(keys[0], (G, input_size))
    w_hh0 = u(keys[1], (G, H))
    b_ih0 = u(keys[2], (G,))
    b_hh0 = u(keys[3], (G,))
    w_ih1 = u(keys[4], (G, H))
    w_hh1 = u(keys[5], (G, H))
    b_ih1 = u(keys[6], (G,))
    b_hh1 = u(keys[7], (G,))
    w_fc = u(keys[8], (1, H))
    b_fc = u(keys[9], (1,))

    # Fused recurrent weight block for the wavefront step:
    #   [h0 | h1] @ [[wih1_t, whh0_t],
    #                [whh1_t,   0   ]]  ->  [layer-1 pre-bias gates | h0 @ whh0_t]
    wcat = jnp.concatenate(
        [jnp.concatenate([w_ih1.T, w_hh0.T], axis=1),
         jnp.concatenate([w_hh1.T, jnp.zeros((H, G), jnp.float32)], axis=1)],
        axis=0)                                                  # (2H, 8H)

    return {
        # f32 copies (pure-JAX reference / potential long-T f32 fallback)
        "wih0_t": w_ih0.T, "whh0_t": w_hh0.T, "b0": (b_ih0 + b_hh0).reshape(1, G),
        "wih1_t": w_ih1.T, "whh1_t": w_hh1.T, "b1": (b_ih1 + b_hh1).reshape(1, G),
        "wfc_row": w_fc, "bfc": b_fc.reshape(1, 1),
        # one-time kernel prep: bf16 MXU operands (cast here, NOT per forward)
        "wih0_bf16": w_ih0.T.astype(jnp.bfloat16),
        "wcat_bf16": wcat.astype(jnp.bfloat16),
    }


def reference_forward(x, params):
    """Pure-JAX f32 reference of the PyTorch forward for correctness checking."""
    B, T, _ = x.shape
    H = HIDDEN_SIZE

    def cell(x_t, h, c, wih_t, whh_t, b):
        gates = x_t @ wih_t + h @ whh_t + b
        i = jax.nn.sigmoid(gates[:, :H])
        f = jax.nn.sigmoid(gates[:, H:2 * H])
        g = jnp.tanh(gates[:, 2 * H:3 * H])
        o = jax.nn.sigmoid(gates[:, 3 * H:])
        c = f * c + i * g
        h = o * jnp.tanh(c)
        return h, c

    h = jnp.zeros((B, H)); c = jnp.zeros((B, H))
    seq = []
    for t in range(T):
        h, c = cell(x[:, t, :], h, c, params["wih0_t"], params["whh0_t"], params["b0"])
        seq.append(h)
    h = jnp.zeros((B, H)); c = jnp.zeros((B, H))
    for t in range(T):
        h, c = cell(seq[t], h, c, params["wih1_t"], params["whh1_t"], params["b1"])
    return jax.nn.sigmoid(h @ params["wfc_row"].T + params["bfc"])


if __name__ == "__main__":
    key = jax.random.PRNGKey(0)
    k_x, k_p = jax.random.split(key)

    B, T = 2, 8
    x = jax.random.normal(k_x, (B, T, INPUT_SIZE), jnp.float32)
    params = init_params(k_p)

    out = lstm_model_forward(x, params)
    out = jax.block_until_ready(out)

    ref = jax.block_until_ready(reference_forward(x, params))
    assert out.shape == (B, 1)
    # Tolerance loosened vs. a pure-f32 version because the MXU operands are bf16
    # (f32 accumulation); observed error is ~1e-3 on the sigmoid output at T=8.
    # Note: bf16 recurrent rounding compounds with T — revisit for long sequences.
    assert jnp.allclose(out, ref, atol=2e-2, rtol=2e-2), (out, ref)

    print("KERNEL_OK")
</pallas_src>

<mosaic_0001>
module attributes {stable_mosaic.version = 11 : i64} {
  func.func @lstm_model_kernel(%arg0: memref<16x4xf32, #tpu.memory_space<vmem>>, %arg1: memref<4x256xbf16, #tpu.memory_space<vmem>>, %arg2: memref<1x256xf32, #tpu.memory_space<vmem>>, %arg3: memref<128x512xbf16, #tpu.memory_space<vmem>>, %arg4: memref<1x256xf32, #tpu.memory_space<vmem>>, %arg5: memref<1x64xf32, #tpu.memory_space<vmem>>, %arg6: memref<1x1xf32, #tpu.memory_space<vmem>>, %arg7: memref<2x1xf32, #tpu.memory_space<vmem>>) attributes {dimension_semantics = [], scalar_prefetch = 0 : i64, scratch_operands = 0 : i64, tpu.core_type = #tpu.core_type<tc>} {
    %c0 = arith.constant 0 : index
    %c0_0 = arith.constant 0 : index
    %0 = vector.load %arg4[%c0, %c0_0] : memref<1x256xf32, #tpu.memory_space<vmem>>, vector<1x256xf32>
    %1 = vector.shape_cast %0 : vector<1x256xf32> to vector<1x256xf32>
    %2 = vector.broadcast %1 : vector<1x256xf32> to vector<2x256xf32>
    %c0_1 = arith.constant 0 : index
    %c0_2 = arith.constant 0 : index
    %3 = vector.load %arg0[%c0_1, %c0_2] : memref<16x4xf32, #tpu.memory_space<vmem>>, vector<16x4xf32>
    %4 = arith.truncf %3 : vector<16x4xf32> to vector<16x4xbf16>
    %c0_3 = arith.constant 0 : index
    %c0_4 = arith.constant 0 : index
    %5 = vector.load %arg1[%c0_3, %c0_4] : memref<4x256xbf16, #tpu.memory_space<vmem>>, vector<4x256xbf16>
    %cst = arith.constant dense<0.000000e+00> : vector<16x256xf32>
    %6 = tpu.matmul %4, %5, %cst {dimension_numbers = #tpu.dot_dimension_numbers<[1], [0], [0], [1], [0, 0, 1, 1], [], []>} : vector<16x4xbf16>, vector<4x256xbf16>, vector<16x256xf32> -> vector<16x256xf32>
    %c0_5 = arith.constant 0 : index
    %c0_6 = arith.constant 0 : index
    %7 = vector.load %arg2[%c0_5, %c0_6] : memref<1x256xf32, #tpu.memory_space<vmem>>, vector<1x256xf32>
    %8 = vector.broadcast %7 : vector<1x256xf32> to vector<16x256xf32>
    %9 = arith.addf %6, %8 : vector<16x256xf32>
    %10 = vector.shape_cast %9 : vector<16x256xf32> to vector<8x2x256xf32>
    %cst_7 = arith.constant 0.000000e+00 : f32
    %11 = vector.broadcast %cst_7 : f32 to vector<2x64xf32>
    %cst_8 = arith.constant 0.000000e+00 : f32
    %12 = vector.broadcast %cst_8 : f32 to vector<2x64xf32>
    %cst_9 = arith.constant 0.000000e+00 : f32
    %13 = vector.broadcast %cst_9 : f32 to vector<2x64xf32>
    %14 = vector.extract_strided_slice %10 {offsets = [0, 0, 0], sizes = [1, 2, 256], strides = [1, 1, 1]} : vector<8x2x256xf32> to vector<1x2x256xf32>
    %15 = vector.shape_cast %14 : vector<1x2x256xf32> to vector<2x256xf32>
    %16 = arith.negf %15 : vector<2x256xf32>
    %17 = math.exp %16 : vector<2x256xf32>
    %cst_10 = arith.constant 1.000000e+00 : f32
    %18 = vector.broadcast %cst_10 : f32 to vector<2x256xf32>
    %19 = arith.addf %18, %17 : vector<2x256xf32>
    %20 = arith.divf %18, %19 : vector<2x256xf32>
    %21 = vector.extract_strided_slice %20 {offsets = [0, 0], sizes = [2, 64], strides = [1, 1]} : vector<2x256xf32> to vector<2x64xf32>
    %22 = vector.extract_strided_slice %20 {offsets = [0, 64], sizes = [2, 64], strides = [1, 1]} : vector<2x256xf32> to vector<2x64xf32>
    %23 = vector.extract_strided_slice %20 {offsets = [0, 192], sizes = [2, 64], strides = [1, 1]} : vector<2x256xf32> to vector<2x64xf32>
    %24 = vector.extract_strided_slice %15 {offsets = [0, 128], sizes = [2, 64], strides = [1, 1]} : vector<2x256xf32> to vector<2x64xf32>
    %25 = math.tanh %24 : vector<2x64xf32>
    %26 = arith.mulf %22, %11 : vector<2x64xf32>
    %27 = arith.mulf %21, %25 : vector<2x64xf32>
    %28 = arith.addf %26, %27 : vector<2x64xf32>
    %29 = math.tanh %28 : vector<2x64xf32>
    %30 = arith.mulf %23, %29 : vector<2x64xf32>
    %31 = tpu.concatenate %30, %12 in 1 : vector<2x64xf32>, vector<2x64xf32> -> vector<2x128xf32>
    %32 = arith.truncf %31 : vector<2x128xf32> to vector<2x128xbf16>
    %c0_11 = arith.constant 0 : index
    %c0_12 = arith.constant 0 : index
    %33 = vector.load %arg3[%c0_11, %c0_12] : memref<128x512xbf16, #tpu.memory_space<vmem>>, vector<128x512xbf16>
    %cst_13 = arith.constant dense<0.000000e+00> : vector<2x512xf32>
    %34 = tpu.matmul %32, %33, %cst_13 {dimension_numbers = #tpu.dot_dimension_numbers<[1], [0], [0], [1], [0, 0, 1, 1], [], []>} : vector<2x128xbf16>, vector<128x512xbf16>, vector<2x512xf32> -> vector<2x512xf32>
    %35 = vector.extract_strided_slice %34 {offsets = [0, 0], sizes = [2, 256], strides = [1, 1]} : vector<2x512xf32> to vector<2x256xf32>
    %36 = arith.addf %35, %2 : vector<2x256xf32>
    %37 = arith.negf %36 : vector<2x256xf32>
    %38 = math.exp %37 : vector<2x256xf32>
    %cst_14 = arith.constant 1.000000e+00 : f32
    %39 = vector.broadcast %cst_14 : f32 to vector<2x256xf32>
    %40 = arith.addf %39, %38 : vector<2x256xf32>
    %41 = arith.divf %39, %40 : vector<2x256xf32>
    %42 = vector.extract_strided_slice %41 {offsets = [0, 0], sizes = [2, 64], strides = [1, 1]} : vector<2x256xf32> to vector<2x64xf32>
    %43 = vector.extract_strided_slice %41 {offsets = [0, 64], sizes = [2, 64], strides = [1, 1]} : vector<2x256xf32> to vector<2x64xf32>
    %44 = vector.extract_strided_slice %41 {offsets = [0, 192], sizes = [2, 64], strides = [1, 1]} : vector<2x256xf32> to vector<2x64xf32>
    %45 = vector.extract_strided_slice %36 {offsets = [0, 128], sizes = [2, 64], strides = [1, 1]} : vector<2x256xf32> to vector<2x64xf32>
    %46 = math.tanh %45 : vector<2x64xf32>
    %47 = arith.mulf %43, %13 : vector<2x64xf32>
    %48 = arith.mulf %42, %46 : vector<2x64xf32>
    %49 = arith.addf %47, %48 : vector<2x64xf32>
    %50 = math.tanh %49 : vector<2x64xf32>
    %51 = arith.mulf %44, %50 : vector<2x64xf32>
    %52 = vector.extract_strided_slice %10 {offsets = [1, 0, 0], sizes = [1, 2, 256], strides = [1, 1, 1]} : vector<8x2x256xf32> to vector<1x2x256xf32>
    %53 = vector.shape_cast %52 : vector<1x2x256xf32> to vector<2x256xf32>
    %54 = vector.extract_strided_slice %34 {offsets = [0, 256], sizes = [2, 256], strides = [1, 1]} : vector<2x512xf32> to vector<2x256xf32>
    %55 = arith.addf %53, %54 : vector<2x256xf32>
    %56 = arith.negf %55 : vector<2x256xf32>
    %57 = math.exp %56 : vector<2x256xf32>
    %cst_15 = arith.constant 1.000000e+00 : f32
    %58 = vector.broadcast %cst_15 : f32 to vector<2x256xf32>
    %59 = arith.addf %58, %57 : vector<2x256xf32>
    %60 = arith.divf %58, %59 : vector<2x256xf32>
    %61 = vector.extract_strided_slice %60 {offsets = [0, 0], sizes = [2, 64], strides = [1, 1]} : vector<2x256xf32> to vector<2x64xf32>
    %62 = vector.extract_strided_slice %60 {offsets = [0, 64], sizes = [2, 64], strides = [1, 1]} : vector<2x256xf32> to vector<2x64xf32>
    %63 = vector.extract_strided_slice %60 {offsets = [0, 192], sizes = [2, 64], strides = [1, 1]} : vector<2x256xf32> to vector<2x64xf32>
    %64 = vector.extract_strided_slice %55 {offsets = [0, 128], sizes = [2, 64], strides = [1, 1]} : vector<2x256xf32> to vector<2x64xf32>
    %65 = math.tanh %64 : vector<2x64xf32>
    %66 = arith.mulf %62, %28 : vector<2x64xf32>
    %67 = arith.mulf %61, %65 : vector<2x64xf32>
    %68 = arith.addf %66, %67 : vector<2x64xf32>
    %69 = math.tanh %68 : vector<2x64xf32>
    %70 = arith.mulf %63, %69 : vector<2x64xf32>
    %71 = tpu.concatenate %70, %51 in 1 : vector<2x64xf32>, vector<2x64xf32> -> vector<2x128xf32>
    %72 = arith.truncf %71 : vector<2x128xf32> to vector<2x128xbf16>
    %c0_16 = arith.constant 0 : index
    %c0_17 = arith.constant 0 : index
    %73 = vector.load %arg3[%c0_16, %c0_17] : memref<128x512xbf16, #tpu.memory_space<vmem>>, vector<128x512xbf16>
    %cst_18 = arith.constant dense<0.000000e+00> : vector<2x512xf32>
    %74 = tpu.matmul %72, %73, %cst_18 {dimension_numbers = #tpu.dot_dimension_numbers<[1], [0], [0], [1], [0, 0, 1, 1], [], []>} : vector<2x128xbf16>, vector<128x512xbf16>, vector<2x512xf32> -> vector<2x512xf32>
    %75 = vector.extract_strided_slice %74 {offsets = [0, 0], sizes = [2, 256], strides = [1, 1]} : vector<2x512xf32> to vector<2x256xf32>
    %76 = arith.addf %75, %2 : vector<2x256xf32>
    %77 = arith.negf %76 : vector<2x256xf32>
    %78 = math.exp %77 : vector<2x256xf32>
    %cst_19 = arith.constant 1.000000e+00 : f32
    %79 = vector.broadcast %cst_19 : f32 to vector<2x256xf32>
    %80 = arith.addf %79, %78 : vector<2x256xf32>
    %81 = arith.divf %79, %80 : vector<2x256xf32>
    %82 = vector.extract_strided_slice %81 {offsets = [0, 0], sizes = [2, 64], strides = [1, 1]} : vector<2x256xf32> to vector<2x64xf32>
    %83 = vector.extract_strided_slice %81 {offsets = [0, 64], sizes = [2, 64], strides = [1, 1]} : vector<2x256xf32> to vector<2x64xf32>
    %84 = vector.extract_strided_slice %81 {offsets = [0, 192], sizes = [2, 64], strides = [1, 1]} : vector<2x256xf32> to vector<2x64xf32>
    %85 = vector.extract_strided_slice %76 {offsets = [0, 128], sizes = [2, 64], strides = [1, 1]} : vector<2x256xf32> to vector<2x64xf32>
    %86 = math.tanh %85 : vector<2x64xf32>
    %87 = arith.mulf %83, %49 : vector<2x64xf32>
    %88 = arith.mulf %82, %86 : vector<2x64xf32>
    %89 = arith.addf %87, %88 : vector<2x64xf32>
    %90 = math.tanh %89 : vector<2x64xf32>
    %91 = arith.mulf %84, %90 : vector<2x64xf32>
    %92 = vector.extract_strided_slice %10 {offsets = [2, 0, 0], sizes = [1, 2, 256], strides = [1, 1, 1]} : vector<8x2x256xf32> to vector<1x2x256xf32>
    %93 = vector.shape_cast %92 : vector<1x2x256xf32> to vector<2x256xf32>
    %94 = vector.extract_strided_slice %74 {offsets = [0, 256], sizes = [2, 256], strides = [1, 1]} : vector<2x512xf32> to vector<2x256xf32>
    %95 = arith.addf %93, %94 : vector<2x256xf32>
    %96 = arith.negf %95 : vector<2x256xf32>
    %97 = math.exp %96 : vector<2x256xf32>
    %cst_20 = arith.constant 1.000000e+00 : f32
    %98 = vector.broadcast %cst_20 : f32 to vector<2x256xf32>
    %99 = arith.addf %98, %97 : vector<2x256xf32>
    %100 = arith.divf %98, %99 : vector<2x256xf32>
    %101 = vector.extract_strided_slice %100 {offsets = [0, 0], sizes = [2, 64], strides = [1, 1]} : vector<2x256xf32> to vector<2x64xf32>
    %102 = vector.extract_strided_slice %100 {offsets = [0, 64], sizes = [2, 64], strides = [1, 1]} : vector<2x256xf32> to vector<2x64xf32>
    %103 = vector.extract_strided_slice %100 {offsets = [0, 192], sizes = [2, 64], strides = [1, 1]} : vector<2x256xf32> to vector<2x64xf32>
    %104 = vector.extract_strided_slice %95 {offsets = [0, 128], sizes = [2, 64], strides = [1, 1]} : vector<2x256xf32> to vector<2x64xf32>
    %105 = math.tanh %104 : vector<2x64xf32>
    %106 = arith.mulf %102, %68 : vector<2x64xf32>
    %107 = arith.mulf %101, %105 : vector<2x64xf32>
    %108 = arith.addf %106, %107 : vector<2x64xf32>
    %109 = math.tanh %108 : vector<2x64xf32>
    %110 = arith.mulf %103, %109 : vector<2x64xf32>
    %111 = tpu.concatenate %110, %91 in 1 : vector<2x64xf32>, vector<2x64xf32> -> vector<2x128xf32>
    %112 = arith.truncf %111 : vector<2x128xf32> to vector<2x128xbf16>
    %c0_21 = arith.constant 0 : index
    %c0_22 = arith.constant 0 : index
    %113 = vector.load %arg3[%c0_21, %c0_22] : memref<128x512xbf16, #tpu.memory_space<vmem>>, vector<128x512xbf16>
    %cst_23 = arith.constant dense<0.000000e+00> : vector<2x512xf32>
    %114 = tpu.matmul %112, %113, %cst_23 {dimension_numbers = #tpu.dot_dimension_numbers<[1], [0], [0], [1], [0, 0, 1, 1], [], []>} : vector<2x128xbf16>, vector<128x512xbf16>, vector<2x512xf32> -> vector<2x512xf32>
    %115 = vector.extract_strided_slice %114 {offsets = [0, 0], sizes = [2, 256], strides = [1, 1]} : vector<2x512xf32> to vector<2x256xf32>
    %116 = arith.addf %115, %2 : vector<2x256xf32>
    %117 = arith.negf %116 : vector<2x256xf32>
    %118 = math.exp %117 : vector<2x256xf32>
    %cst_24 = arith.constant 1.000000e+00 : f32
    %119 = vector.broadcast %cst_24 : f32 to vector<2x256xf32>
    %120 = arith.addf %119, %118 : vector<2x256xf32>
    %121 = arith.divf %119, %120 : vector<2x256xf32>
    %122 = vector.extract_strided_slice %121 {offsets = [0, 0], sizes = [2, 64], strides = [1, 1]} : vector<2x256xf32> to vector<2x64xf32>
    %123 = vector.extract_strided_slice %121 {offsets = [0, 64], sizes = [2, 64], strides = [1, 1]} : vector<2x256xf32> to vector<2x64xf32>
    %124 = vector.extract_strided_slice %121 {offsets = [0, 192], sizes = [2, 64], strides = [1, 1]} : vector<2x256xf32> to vector<2x64xf32>
    %125 = vector.extract_strided_slice %116 {offsets = [0, 128], sizes = [2, 64], strides = [1, 1]} : vector<2x256xf32> to vector<2x64xf32>
    %126 = math.tanh %125 : vector<2x64xf32>
    %127 = arith.mulf %123, %89 : vector<2x64xf32>
    %128 = arith.mulf %122, %126 : vector<2x64xf32>
    %129 = arith.addf %127, %128 : vector<2x64xf32>
    %130 = math.tanh %129 : vector<2x64xf32>
    %131 = arith.mulf %124, %130 : vector<2x64xf32>
    %132 = vector.extract_strided_slice %10 {offsets = [3, 0, 0], sizes = [1, 2, 256], strides = [1, 1, 1]} : vector<8x2x256xf32> to vector<1x2x256xf32>
    %133 = vector.shape_cast %132 : vector<1x2x256xf32> to vector<2x256xf32>
    %134 = vector.extract_strided_slice %114 {offsets = [0, 256], sizes = [2, 256], strides = [1, 1]} : vector<2x512xf32> to vector<2x256xf32>
    %135 = arith.addf %133, %134 : vector<2x256xf32>
    %136 = arith.negf %135 : vector<2x256xf32>
    %137 = math.exp %136 : vector<2x256xf32>
    %cst_25 = arith.constant 1.000000e+00 : f32
    %138 = vector.broadcast %cst_25 : f32 to vector<2x256xf32>
    %139 = arith.addf %138, %137 : vector<2x256xf32>
    %140 = arith.divf %138, %139 : vector<2x256xf32>
    %141 = vector.extract_strided_slice %140 {offsets = [0, 0], sizes = [2, 64], strides = [1, 1]} : vector<2x256xf32> to vector<2x64xf32>
    %142 = vector.extract_strided_slice %140 {offsets = [0, 64], sizes = [2, 64], strides = [1, 1]} : vector<2x256xf32> to vector<2x64xf32>
    %143 = vector.extract_strided_slice %140 {offsets = [0, 192], sizes = [2, 64], strides = [1, 1]} : vector<2x256xf32> to vector<2x64xf32>
    %144 = vector.extract_strided_slice %135 {offsets = [0, 128], sizes = [2, 64], strides = [1, 1]} : vector<2x256xf32> to vector<2x64xf32>
    %145 = math.tanh %144 : vector<2x64xf32>
    %146 = arith.mulf %142, %108 : vector<2x64xf32>
    %147 = arith.mulf %141, %145 : vector<2x64xf32>
    %148 = arith.addf %146, %147 : vector<2x64xf32>
    %149 = math.tanh %148 : vector<2x64xf32>
    %150 = arith.mulf %143, %149 : vector<2x64xf32>
    %151 = tpu.concatenate %150, %131 in 1 : vector<2x64xf32>, vector<2x64xf32> -> vector<2x128xf32>
    %152 = arith.truncf %151 : vector<2x128xf32> to vector<2x128xbf16>
    %c0_26 = arith.constant 0 : index
    %c0_27 = arith.constant 0 : index
    %153 = vector.load %arg3[%c0_26, %c0_27] : memref<128x512xbf16, #tpu.memory_space<vmem>>, vector<128x512xbf16>
    %cst_28 = arith.constant dense<0.000000e+00> : vector<2x512xf32>
    %154 = tpu.matmul %152, %153, %cst_28 {dimension_numbers = #tpu.dot_dimension_numbers<[1], [0], [0], [1], [0, 0, 1, 1], [], []>} : vector<2x128xbf16>, vector<128x512xbf16>, vector<2x512xf32> -> vector<2x512xf32>
    %155 = vector.extract_strided_slice %154 {offsets = [0, 0], sizes = [2, 256], strides = [1, 1]} : vector<2x512xf32> to vector<2x256xf32>
    %156 = arith.addf %155, %2 : vector<2x256xf32>
    %157 = arith.negf %156 : vector<2x256xf32>
    %158 = math.exp %157 : vector<2x256xf32>
    %cst_29 = arith.constant 1.000000e+00 : f32
    %159 = vector.broadcast %cst_29 : f32 to vector<2x256xf32>
    %160 = arith.addf %159, %158 : vector<2x256xf32>
    %161 = arith.divf %159, %160 : vector<2x256xf32>
    %162 = vector.extract_strided_slice %161 {offsets = [0, 0], sizes = [2, 64], strides = [1, 1]} : vector<2x256xf32> to vector<2x64xf32>
    %163 = vector.extract_strided_slice %161 {offsets = [0, 64], sizes = [2, 64], strides = [1, 1]} : vector<2x256xf32> to vector<2x64xf32>
    %164 = vector.extract_strided_slice %161 {offsets = [0, 192], sizes = [2, 64], strides = [1, 1]} : vector<2x256xf32> to vector<2x64xf32>
    %165 = vector.extract_strided_slice %156 {offsets = [0, 128], sizes = [2, 64], strides = [1, 1]} : vector<2x256xf32> to vector<2x64xf32>
    %166 = math.tanh %165 : vector<2x64xf32>
    %167 = arith.mulf %163, %129 : vector<2x64xf32>
    %168 = arith.mulf %162, %166 : vector<2x64xf32>
    %169 = arith.addf %167, %168 : vector<2x64xf32>
    %170 = math.tanh %169 : vector<2x64xf32>
    %171 = arith.mulf %164, %170 : vector<2x64xf32>
    %172 = vector.extract_strided_slice %10 {offsets = [4, 0, 0], sizes = [1, 2, 256], strides = [1, 1, 1]} : vector<8x2x256xf32> to vector<1x2x256xf32>
    %173 = vector.shape_cast %172 : vector<1x2x256xf32> to vector<2x256xf32>
    %174 = vector.extract_strided_slice %154 {offsets = [0, 256], sizes = [2, 256], strides = [1, 1]} : vector<2x512xf32> to vector<2x256xf32>
    %175 = arith.addf %173, %174 : vector<2x256xf32>
    %176 = arith.negf %175 : vector<2x256xf32>
    %177 = math.exp %176 : vector<2x256xf32>
    %cst_30 = arith.constant 1.000000e+00 : f32
    %178 = vector.broadcast %cst_30 : f32 to vector<2x256xf32>
    %179 = arith.addf %178, %177 : vector<2x256xf32>
    %180 = arith.divf %178, %179 : vector<2x256xf32>
    %181 = vector.extract_strided_slice %180 {offsets = [0, 0], sizes = [2, 64], strides = [1, 1]} : vector<2x256xf32> to vector<2x64xf32>
    %182 = vector.extract_strided_slice %180 {offsets = [0, 64], sizes = [2, 64], strides = [1, 1]} : vector<2x256xf32> to vector<2x64xf32>
    %183 = vector.extract_strided_slice %180 {offsets = [0, 192], sizes = [2, 64], strides = [1, 1]} : vector<2x256xf32> to vector<2x64xf32>
    %184 = vector.extract_strided_slice %175 {offsets = [0, 128], sizes = [2, 64], strides = [1, 1]} : vector<2x256xf32> to vector<2x64xf32>
    %185 = math.tanh %184 : vector<2x64xf32>
    %186 = arith.mulf %182, %148 : vector<2x64xf32>
    %187 = arith.mulf %181, %185 : vector<2x64xf32>
    %188 = arith.addf %186, %187 : vector<2x64xf32>
    %189 = math.tanh %188 : vector<2x64xf32>
    %190 = arith.mulf %183, %189 : vector<2x64xf32>
    %191 = tpu.concatenate %190, %171 in 1 : vector<2x64xf32>, vector<2x64xf32> -> vector<2x128xf32>
    %192 = arith.truncf %191 : vector<2x128xf32> to vector<2x128xbf16>
    %c0_31 = arith.constant 0 : index
    %c0_32 = arith.constant 0 : index
    %193 = vector.load %arg3[%c0_31, %c0_32] : memref<128x512xbf16, #tpu.memory_space<vmem>>, vector<128x512xbf16>
    %cst_33 = arith.constant dense<0.000000e+00> : vector<2x512xf32>
    %194 = tpu.matmul %192, %193, %cst_33 {dimension_numbers = #tpu.dot_dimension_numbers<[1], [0], [0], [1], [0, 0, 1, 1], [], []>} : vector<2x128xbf16>, vector<128x512xbf16>, vector<2x512xf32> -> vector<2x512xf32>
    %195 = vector.extract_strided_slice %194 {offsets = [0, 0], sizes = [2, 256], strides = [1, 1]} : vector<2x512xf32> to vector<2x256xf32>
    %196 = arith.addf %195, %2 : vector<2x256xf32>
    %197 = arith.negf %196 : vector<2x256xf32>
    %198 = math.exp %197 : vector<2x256xf32>
    %cst_34 = arith.constant 1.000000e+00 : f32
    %199 = vector.broadcast %cst_34 : f32 to vector<2x256xf32>
    %200 = arith.addf %199, %198 : vector<2x256xf32>
    %201 = arith.divf %199, %200 : vector<2x256xf32>
    %202 = vector.extract_strided_slice %201 {offsets = [0, 0], sizes = [2, 64], strides = [1, 1]} : vector<2x256xf32> to vector<2x64xf32>
    %203 = vector.extract_strided_slice %201 {offsets = [0, 64], sizes = [2, 64], strides = [1, 1]} : vector<2x256xf32> to vector<2x64xf32>
    %204 = vector.extract_strided_slice %201 {offsets = [0, 192], sizes = [2, 64], strides = [1, 1]} : vector<2x256xf32> to vector<2x64xf32>
    %205 = vector.extract_strided_slice %196 {offsets = [0, 128], sizes = [2, 64], strides = [1, 1]} : vector<2x256xf32> to vector<2x64xf32>
    %206 = math.tanh %205 : vector<2x64xf32>
    %207 = arith.mulf %203, %169 : vector<2x64xf32>
    %208 = arith.mulf %202, %206 : vector<2x64xf32>
    %209 = arith.addf %207, %208 : vector<2x64xf32>
    %210 = math.tanh %209 : vector<2x64xf32>
    %211 = arith.mulf %204, %210 : vector<2x64xf32>
    %212 = vector.extract_strided_slice %10 {offsets = [5, 0, 0], sizes = [1, 2, 256], strides = [1, 1, 1]} : vector<8x2x256xf32> to vector<1x2x256xf32>
    %213 = vector.shape_cast %212 : vector<1x2x256xf32> to vector<2x256xf32>
    %214 = vector.extract_strided_slice %194 {offsets = [0, 256], sizes = [2, 256], strides = [1, 1]} : vector<2x512xf32> to vector<2x256xf32>
    %215 = arith.addf %213, %214 : vector<2x256xf32>
    %216 = arith.negf %215 : vector<2x256xf32>
    %217 = math.exp %216 : vector<2x256xf32>
    %cst_35 = arith.constant 1.000000e+00 : f32
    %218 = vector.broadcast %cst_35 : f32 to vector<2x256xf32>
    %219 = arith.addf %218, %217 : vector<2x256xf32>
    %220 = arith.divf %218, %219 : vector<2x256xf32>
    %221 = vector.extract_strided_slice %220 {offsets = [0, 0], sizes = [2, 64], strides = [1, 1]} : vector<2x256xf32> to vector<2x64xf32>
    %222 = vector.extract_strided_slice %220 {offsets = [0, 64], sizes = [2, 64], strides = [1, 1]} : vector<2x256xf32> to vector<2x64xf32>
    %223 = vector.extract_strided_slice %220 {offsets = [0, 192], sizes = [2, 64], strides = [1, 1]} : vector<2x256xf32> to vector<2x64xf32>
    %224 = vector.extract_strided_slice %215 {offsets = [0, 128], sizes = [2, 64], strides = [1, 1]} : vector<2x256xf32> to vector<2x64xf32>
    %225 = math.tanh %224 : vector<2x64xf32>
    %226 = arith.mulf %222, %188 : vector<2x64xf32>
    %227 = arith.mulf %221, %225 : vector<2x64xf32>
    %228 = arith.addf %226, %227 : vector<2x64xf32>
    %229 = math.tanh %228 : vector<2x64xf32>
    %230 = arith.mulf %223, %229 : vector<2x64xf32>
    %231 = tpu.concatenate %230, %211 in 1 : vector<2x64xf32>, vector<2x64xf32> -> vector<2x128xf32>
    %232 = arith.truncf %231 : vector<2x128xf32> to vector<2x128xbf16>
    %c0_36 = arith.constant 0 : index
    %c0_37 = arith.constant 0 : index
    %233 = vector.load %arg3[%c0_36, %c0_37] : memref<128x512xbf16, #tpu.memory_space<vmem>>, vector<128x512xbf16>
    %cst_38 = arith.constant dense<0.000000e+00> : vector<2x512xf32>
    %234 = tpu.matmul %232, %233, %cst_38 {dimension_numbers = #tpu.dot_dimension_numbers<[1], [0], [0], [1], [0, 0, 1, 1], [], []>} : vector<2x128xbf16>, vector<128x512xbf16>, vector<2x512xf32> -> vector<2x512xf32>
    %235 = vector.extract_strided_slice %234 {offsets = [0, 0], sizes = [2, 256], strides = [1, 1]} : vector<2x512xf32> to vector<2x256xf32>
    %236 = arith.addf %235, %2 : vector<2x256xf32>
    %237 = arith.negf %236 : vector<2x256xf32>
    %238 = math.exp %237 : vector<2x256xf32>
    %cst_39 = arith.constant 1.000000e+00 : f32
    %239 = vector.broadcast %cst_39 : f32 to vector<2x256xf32>
    %240 = arith.addf %239, %238 : vector<2x256xf32>
    %241 = arith.divf %239, %240 : vector<2x256xf32>
    %242 = vector.extract_strided_slice %241 {offsets = [0, 0], sizes = [2, 64], strides = [1, 1]} : vector<2x256xf32> to vector<2x64xf32>
    %243 = vector.extract_strided_slice %241 {offsets = [0, 64], sizes = [2, 64], strides = [1, 1]} : vector<2x256xf32> to vector<2x64xf32>
    %244 = vector.extract_strided_slice %241 {offsets = [0, 192], sizes = [2, 64], strides = [1, 1]} : vector<2x256xf32> to vector<2x64xf32>
    %245 = vector.extract_strided_slice %236 {offsets = [0, 128], sizes = [2, 64], strides = [1, 1]} : vector<2x256xf32> to vector<2x64xf32>
    %246 = math.tanh %245 : vector<2x64xf32>
    %247 = arith.mulf %243, %209 : vector<2x64xf32>
    %248 = arith.mulf %242, %246 : vector<2x64xf32>
    %249 = arith.addf %247, %248 : vector<2x64xf32>
    %250 = math.tanh %249 : vector<2x64xf32>
    %251 = arith.mulf %244, %250 : vector<2x64xf32>
    %252 = vector.extract_strided_slice %10 {offsets = [6, 0, 0], sizes = [1, 2, 256], strides = [1, 1, 1]} : vector<8x2x256xf32> to vector<1x2x256xf32>
    %253 = vector.shape_cast %252 : vector<1x2x256xf32> to vector<2x256xf32>
    %254 = vector.extract_strided_slice %234 {offsets = [0, 256], sizes = [2, 256], strides = [1, 1]} : vector<2x512xf32> to vector<2x256xf32>
    %255 = arith.addf %253, %254 : vector<2x256xf32>
    %256 = arith.negf %255 : vector<2x256xf32>
    %257 = math.exp %256 : vector<2x256xf32>
    %cst_40 = arith.constant 1.000000e+00 : f32
    %258 = vector.broadcast %cst_40 : f32 to vector<2x256xf32>
    %259 = arith.addf %258, %257 : vector<2x256xf32>
    %260 = arith.divf %258, %259 : vector<2x256xf32>
    %261 = vector.extract_strided_slice %260 {offsets = [0, 0], sizes = [2, 64], strides = [1, 1]} : vector<2x256xf32> to vector<2x64xf32>
    %262 = vector.extract_strided_slice %260 {offsets = [0, 64], sizes = [2, 64], strides = [1, 1]} : vector<2x256xf32> to vector<2x64xf32>
    %263 = vector.extract_strided_slice %260 {offsets = [0, 192], sizes = [2, 64], strides = [1, 1]} : vector<2x256xf32> to vector<2x64xf32>
    %264 = vector.extract_strided_slice %255 {offsets = [0, 128], sizes = [2, 64], strides = [1, 1]} : vector<2x256xf32> to vector<2x64xf32>
    %265 = math.tanh %264 : vector<2x64xf32>
    %266 = arith.mulf %262, %228 : vector<2x64xf32>
    %267 = arith.mulf %261, %265 : vector<2x64xf32>
    %268 = arith.addf %266, %267 : vector<2x64xf32>
    %269 = math.tanh %268 : vector<2x64xf32>
    %270 = arith.mulf %263, %269 : vector<2x64xf32>
    %271 = tpu.concatenate %270, %251 in 1 : vector<2x64xf32>, vector<2x64xf32> -> vector<2x128xf32>
    %272 = arith.truncf %271 : vector<2x128xf32> to vector<2x128xbf16>
    %c0_41 = arith.constant 0 : index
    %c0_42 = arith.constant 0 : index
    %273 = vector.load %arg3[%c0_41, %c0_42] : memref<128x512xbf16, #tpu.memory_space<vmem>>, vector<128x512xbf16>
    %cst_43 = arith.constant dense<0.000000e+00> : vector<2x512xf32>
    %274 = tpu.matmul %272, %273, %cst_43 {dimension_numbers = #tpu.dot_dimension_numbers<[1], [0], [0], [1], [0, 0, 1, 1], [], []>} : vector<2x128xbf16>, vector<128x512xbf16>, vector<2x512xf32> -> vector<2x512xf32>
    %275 = vector.extract_strided_slice %274 {offsets = [0, 0], sizes = [2, 256], strides = [1, 1]} : vector<2x512xf32> to vector<2x256xf32>
    %276 = arith.addf %275, %2 : vector<2x256xf32>
    %277 = arith.negf %276 : vector<2x256xf32>
    %278 = math.exp %277 : vector<2x256xf32>
    %cst_44 = arith.constant 1.000000e+00 : f32
    %279 = vector.broadcast %cst_44 : f32 to vector<2x256xf32>
    %280 = arith.addf %279, %278 : vector<2x256xf32>
    %281 = arith.divf %279, %280 : vector<2x256xf32>
    %282 = vector.extract_strided_slice %281 {offsets = [0, 0], sizes = [2, 64], strides = [1, 1]} : vector<2x256xf32> to vector<2x64xf32>
    %283 = vector.extract_strided_slice %281 {offsets = [0, 64], sizes = [2, 64], strides = [1, 1]} : vector<2x256xf32> to vector<2x64xf32>
    %284 = vector.extract_strided_slice %281 {offsets = [0, 192], sizes = [2, 64], strides = [1, 1]} : vector<2x256xf32> to vector<2x64xf32>
    %285 = vector.extract_strided_slice %276 {offsets = [0, 128], sizes = [2, 64], strides = [1, 1]} : vector<2x256xf32> to vector<2x64xf32>
    %286 = math.tanh %285 : vector<2x64xf32>
    %287 = arith.mulf %283, %249 : vector<2x64xf32>
    %288 = arith.mulf %282, %286 : vector<2x64xf32>
    %289 = arith.addf %287, %288 : vector<2x64xf32>
    %290 = math.tanh %289 : vector<2x64xf32>
    %291 = arith.mulf %284, %290 : vector<2x64xf32>
    %292 = vector.extract_strided_slice %10 {offsets = [7, 0, 0], sizes = [1, 2, 256], strides = [1, 1, 1]} : vector<8x2x256xf32> to vector<1x2x256xf32>
    %293 = vector.shape_cast %292 : vector<1x2x256xf32> to vector<2x256xf32>
    %294 = vector.extract_strided_slice %274 {offsets = [0, 256], sizes = [2, 256], strides = [1, 1]} : vector<2x512xf32> to vector<2x256xf32>
    %295 = arith.addf %293, %294 : vector<2x256xf32>
    %296 = arith.negf %295 : vector<2x256xf32>
    %297 = math.exp %296 : vector<2x256xf32>
    %cst_45 = arith.constant 1.000000e+00 : f32
    %298 = vector.broadcast %cst_45 : f32 to vector<2x256xf32>
    %299 = arith.addf %298, %297 : vector<2x256xf32>
    %300 = arith.divf %298, %299 : vector<2x256xf32>
    %301 = vector.extract_strided_slice %300 {offsets = [0, 0], sizes = [2, 64], strides = [1, 1]} : vector<2x256xf32> to vector<2x64xf32>
    %302 = vector.extract_strided_slice %300 {offsets = [0, 64], sizes = [2, 64], strides = [1, 1]} : vector<2x256xf32> to vector<2x64xf32>
    %303 = vector.extract_strided_slice %300 {offsets = [0, 192], sizes = [2, 64], strides = [1, 1]} : vector<2x256xf32> to vector<2x64xf32>
    %304 = vector.extract_strided_slice %295 {offsets = [0, 128], sizes = [2, 64], strides = [1, 1]} : vector<2x256xf32> to vector<2x64xf32>
    %305 = math.tanh %304 : vector<2x64xf32>
    %306 = arith.mulf %302, %268 : vector<2x64xf32>
    %307 = arith.mulf %301, %305 : vector<2x64xf32>
    %308 = arith.addf %306, %307 : vector<2x64xf32>
    %309 = math.tanh %308 : vector<2x64xf32>
    %310 = arith.mulf %303, %309 : vector<2x64xf32>
    %311 = tpu.concatenate %310, %291 in 1 : vector<2x64xf32>, vector<2x64xf32> -> vector<2x128xf32>
    %312 = arith.truncf %311 : vector<2x128xf32> to vector<2x128xbf16>
    %c0_46 = arith.constant 0 : index
    %c0_47 = arith.constant 0 : index
    %313 = vector.load %arg3[%c0_46, %c0_47] : memref<128x512xbf16, #tpu.memory_space<vmem>>, vector<128x512xbf16>
    %cst_48 = arith.constant dense<0.000000e+00> : vector<2x512xf32>
    %314 = tpu.matmul %312, %313, %cst_48 {dimension_numbers = #tpu.dot_dimension_numbers<[1], [0], [0], [1], [0, 0, 1, 1], [], []>} : vector<2x128xbf16>, vector<128x512xbf16>, vector<2x512xf32> -> vector<2x512xf32>
    %315 = vector.extract_strided_slice %314 {offsets = [0, 0], sizes = [2, 256], strides = [1, 1]} : vector<2x512xf32> to vector<2x256xf32>
    %316 = arith.addf %315, %2 : vector<2x256xf32>
    %317 = arith.negf %316 : vector<2x256xf32>
    %318 = math.exp %317 : vector<2x256xf32>
    %cst_49 = arith.constant 1.000000e+00 : f32
    %319 = vector.broadcast %cst_49 : f32 to vector<2x256xf32>
    %320 = arith.addf %319, %318 : vector<2x256xf32>
    %321 = arith.divf %319, %320 : vector<2x256xf32>
    %322 = vector.extract_strided_slice %321 {offsets = [0, 0], sizes = [2, 64], strides = [1, 1]} : vector<2x256xf32> to vector<2x64xf32>
    %323 = vector.extract_strided_slice %321 {offsets = [0, 64], sizes = [2, 64], strides = [1, 1]} : vector<2x256xf32> to vector<2x64xf32>
    %324 = vector.extract_strided_slice %321 {offsets = [0, 192], sizes = [2, 64], strides = [1, 1]} : vector<2x256xf32> to vector<2x64xf32>
    %325 = vector.extract_strided_slice %316 {offsets = [0, 128], sizes = [2, 64], strides = [1, 1]} : vector<2x256xf32> to vector<2x64xf32>
    %326 = math.tanh %325 : vector<2x64xf32>
    %327 = arith.mulf %323, %289 : vector<2x64xf32>
    %328 = arith.mulf %322, %326 : vector<2x64xf32>
    %329 = arith.addf %327, %328 : vector<2x64xf32>
    %330 = math.tanh %329 : vector<2x64xf32>
    %331 = arith.mulf %324, %330 : vector<2x64xf32>
    %c0_50 = arith.constant 0 : index
    %c0_51 = arith.constant 0 : index
    %332 = vector.load %arg5[%c0_50, %c0_51] : memref<1x64xf32, #tpu.memory_space<vmem>>, vector<1x64xf32>
    %333 = vector.broadcast %332 : vector<1x64xf32> to vector<2x64xf32>
    %334 = arith.mulf %331, %333 : vector<2x64xf32>
    %cst_52 = arith.constant dense<0.000000e+00> : vector<2xf32>
    %335 = vector.multi_reduction <add>, %334, %cst_52 [1] : vector<2x64xf32> to vector<2xf32>
    %336 = vector.shape_cast %335 : vector<2xf32> to vector<2x1xf32>
    %c0_53 = arith.constant 0 : index
    %c0_54 = arith.constant 0 : index
    %337 = vector.load %arg6[%c0_53, %c0_54] : memref<1x1xf32, #tpu.memory_space<vmem>>, vector<1x1xf32>
    %338 = vector.broadcast %337 : vector<1x1xf32> to vector<2x1xf32>
    %339 = arith.addf %336, %338 : vector<2x1xf32>
    %340 = arith.negf %339 : vector<2x1xf32>
    %341 = math.exp %340 : vector<2x1xf32>
    %cst_55 = arith.constant 1.000000e+00 : f32
    %342 = vector.broadcast %cst_55 : f32 to vector<2x1xf32>
    %343 = arith.addf %342, %341 : vector<2x1xf32>
    %344 = arith.divf %342, %343 : vector<2x1xf32>
    %c0_56 = arith.constant 0 : index
    %c0_57 = arith.constant 0 : index
    %345 = vector.load %arg7[%c0_56, %c0_57] : memref<2x1xf32, #tpu.memory_space<vmem>>, vector<2x1xf32>
    tpu.vector_store %arg7[%c0_56, %c0_57], %344 {strides = array<i32>} : memref<2x1xf32, #tpu.memory_space<vmem>>, vector<2x1xf32>,
    return
  }
}

</mosaic_0001>

<bundles_post_ra>
// kernel: tpu_custom_call.1
= control target key start
LH: loop header
LB: loop body
LE: loop exit
PB: predicated region body
PF: predicated region fallthrough
CT: control target
= control target key end

     0   :  { %s2477_s0 = inlined_call_operand.vmem [shape: f32[16,4], index: 0, kind: input, shape index: {}]   ;;  %s2478_s1 = inlined_call_operand.vmem [shape: bf16[4,256], index: 1, kind: input, shape index: {}]   ;;  %s2479_s2 = inlined_call_operand.vmem [shape: f32[1,256], index: 2, kind: input, shape index: {}]   ;;  %s2480_s3 = inlined_call_operand.hbm [shape: bf16[128,512], index: 3, kind: input, shape index: {}]   ;;  %s2481_s4 = inlined_call_operand.vmem [shape: f32[1,256], index: 4, kind: input, shape index: {}]   ;;  %s2482_s5 = inlined_call_operand.vmem [shape: f32[1,64], index: 5, kind: input, shape index: {}]   ;;  %s2483_s6 = inlined_call_operand.<no memory space> [shape: f32[1,1], index: 6, kind: input, shape index: {}]   ;;  %s2484_s7 = inlined_call_operand.vmem [shape: f32[2,1], index: 7, kind: output, shape index: {}]  }
   0x1   :  { %v12_v0 = vstv %s2483_s6 }
   0x2   :  { %13 = vst [vmem:[#allocation2] sm:$0x1] %v12_v0 }
   0x3   :  { %14 = vsyncpa [#allocation4], 0  ;;  %s1883_s26 = smov [#allocation3]  }
   0x4   :  { %s26_s27 = sshll.u32 %s1883_s26, 4  ;;  %s27_s27 = int_to_ptr.vmem [resolvable:$true] %s26_s27 }
   0x5   :  { %s1869_s28 = scalar_lea.vmem %s27_s27, 4096  ;;  %p1874_p1 = scmp.lt.s32.totalorder %s27_s27, %s27_s27 }
   0x6   :  { %p1870_p0 = scmp.ne.s32.totalorder %s27_s27, %s1869_s28  ;;  %p1875_p2 = scmp.lt.s32.totalorder %s1869_s28, %s1869_s28 }
   0x8   :  { %p1876_p3 = por %p1875_p2, %p1874_p1 }
   0xa   :  { %p1877_p4 = pnand %p1876_p3, %p1870_p0 }
   0xc   :  { %1880 = shalt.err (!%p1877_p4)
}
   0xd   :  { %s1884_s29 = smov 256   ;;  %s1885_s30 = smov 16  }
   0xe   :  { %32 = dma.hbm_to_vmem [thread:$0]  %s2480_s3, 4096, %s27_s27, [#allocation4], %s1884_s29, %s1884_s29, %s1885_s30  }
   0xf   :  { %1881 = dma.done.wait [#allocation4], 4096  }
  0x10   :  { %1882 = vsyncadd [#allocation4], 4294963200  ;;  %v1886_v1 = vmov 0   ;;  %vm84_vm0 = vcmask 1041408   ;;  %v55_v3 = vld [vmem:[%s2477_s0] sm:$0xff]  ;;  %v56_v4 = vld [vmem:[%s2477_s0 + $0x8] sm:$0xff]  ;;  %v45_v8 = vlaneseq }
  0x11   :  { %123 = vmatprep.mubr.bf16.mxu0 %v1886_v1  ;;  %436 = vmatprep.mubr.bf16.mxu1 %v1886_v1  ;;  %v1544_v2 = vld.sshfl [vmem:[%s2478_s1] sm:$0x33 pattern:$0x76325410]  ;;  %v57_v7 = vpack.c.bf16 %v56_v4, %v55_v3  ;;  %vm80_vm1 = vcmask 31744   ;;  %vm209_vm2 = vcmask 523264  }
  0x12   :  { %v79_v5 = vcombine.high %v1544_v2, %v1544_v2  ;;  %v86_v6 = vsel %vm84_vm0, %v1544_v2, 0  ;;  %v1947_v9 = vshrl.u32 %v45_v8, 7  ;;  %v1887_v11 = vmov 1983009808   ;;  %v59_v14 = vld [vmem:[%s2479_s2] sm:$0x3]  ;;  %vm1580_vm3 = vmpackc.low %vm209_vm2, %vm209_vm2 }
  0x13   :  { %v141_v12 = vunpack.c.l.s4 %v1887_v11  ;;  %s1888_s2 = smov 64   ;;  %v1983_v39 = vld [vmem:[#allocation3 + $0xe4] ss:$16 sps:$4 sm:$0xff]   ;;  %v1985_v40 = vld [vmem:[#allocation3 + $0xec] ss:$16 sps:$4 sm:$0xff]   ;;  %vm1519_vm4 = vcmask 517120  }
  0x14   :  { %1545 = vmatprep.subr.msk.bf16.mxu0 %vm84_vm0, %v79_v5  ;;  %v47_v10 = vsub.s32 0, %v1947_v9  ;;  %v51_v13 = vsub.s32 1, %v1947_v9  ;;  %v1987_v41 = vld [vmem:[#allocation3 + $0xe0] ss:$16 sps:$4 sm:$0xff]   ;;  %v1990_v42 = vld [vmem:[#allocation3 + $0xe8] ss:$16 sps:$4 sm:$0xff]   ;;  %404 = vmatprep.subr.bf16.mxu1 %v1983_v39 }
  0x15   :  { %106 = vmatpush1.bf16.msra.mxu0 %v86_v6  ;;  %v142_v16 = vunpack.c.0.s8 %v141_v12  ;;  %v1992_v43 = vld [vmem:[#allocation3 + $0xc4] ss:$16 sps:$4 sm:$0xff]   ;;  %v1994_v44 = vld [vmem:[#allocation3 + $0xcc] ss:$16 sps:$4 sm:$0xff]   ;;  %405 = vmatpush1.bf16.msra.mxu1 %v1987_v41  ;;  %v2000_v45 = vld [vmem:[#allocation3 + $0xc0] ss:$16 sps:$4 sm:$0xff]  }
  0x16   :  { %v64_v15 = vrot.slane %v59_v14, %v47_v10  ;;  %v68_v17 = vrot.slane %v59_v14, %v51_v13  ;;  %445 = vmatprep.subr.bf16.mxu0 %v1985_v40  ;;  %v2002_v46 = vld [vmem:[#allocation3 + $0xc8] ss:$16 sps:$4 sm:$0xff]   ;;  %406 = vmatprep.subr.bf16.mxu1 %v1992_v43  ;;  %v2006_v47 = vld [vmem:[#allocation3 + $0xa4] ss:$16 sps:$4 sm:$0xff]   ;;  %v2008_v48 = vld [vmem:[#allocation3 + $0xac] ss:$16 sps:$4 sm:$0xff]  }
  0x17   :  { %v1961_v21 = vsub.s32 %v142_v16, %v1947_v9  ;;  %v2012_v49 = vld [vmem:[#allocation3 + $0xa0] ss:$16 sps:$4 sm:$0xff]   ;;  %v2014_v50 = vld [vmem:[#allocation3 + $0xa8] ss:$16 sps:$4 sm:$0xff]   ;;  %v2018_v51 = vld [vmem:[#allocation3 + $0x84] ss:$16 sps:$4 sm:$0xff]  }
  0x18   :  { %1546 = vmatmul.mubr.msk.bf16.vlgmr.msra.gmra.mxu0 %vm80_vm1, %v57_v7  ;;  %v2020_v52 = vld [vmem:[#allocation3 + $0x8c] ss:$16 sps:$4 sm:$0xff]   ;;  %v2024_v53 = vld [vmem:[#allocation3 + $0x80] ss:$16 sps:$4 sm:$0xff]   ;;  %v2026_v54 = vld [vmem:[#allocation3 + $0x88] ss:$16 sps:$4 sm:$0xff]  }
  0x19   :  { %477 = vmatprep.mubr.bf16.mxu0 %v1886_v1  ;;  %446 = vmatpush1.bf16.msra.mxu0 %v1990_v42  ;;  %v2030_v55 = vld [vmem:[#allocation3 + $0x64] ss:$16 sps:$4 sm:$0xff]   ;;  %v2032_v56 = vld [vmem:[#allocation3 + $0x6c] ss:$16 sps:$4 sm:$0xff]   ;;  %v2036_v57 = vld [vmem:[#allocation3 + $0x60] ss:$16 sps:$4 sm:$0xff]  }
  0x1a   :  { %447 = vmatprep.subr.bf16.mxu0 %v1994_v44  ;;  %407 = vmatpush1.bf16.msra.mxu1 %v2000_v45  ;;  %v2038_v58 = vld [vmem:[#allocation3 + $0x68] ss:$16 sps:$4 sm:$0xff]   ;;  %v2042_v59 = vld [vmem:[#allocation3 + $0x44] ss:$16 sps:$4 sm:$0xff]   ;;  %v2044_v60 = vld [vmem:[#allocation3 + $0x4c] ss:$16 sps:$4 sm:$0xff]  }
  0x1b   :  { %408 = vmatprep.subr.bf16.mxu1 %v2006_v47  ;;  %v2048_v61 = vld [vmem:[#allocation3 + $0x40] ss:$16 sps:$4 sm:$0xff]   ;;  %v2050_v62 = vld [vmem:[#allocation3 + $0x48] ss:$16 sps:$4 sm:$0xff]   ;;  %v2054_v63 = vld [vmem:[#allocation3 + $0x24] ss:$16 sps:$4 sm:$0xff]  }
  0x1c   :  { %v2056_v0 = vld [vmem:[#allocation3 + $0x2c] ss:$16 sps:$4 sm:$0xff]   ;;  %v2060_v2 = vld [vmem:[#allocation3 + $0x20] ss:$16 sps:$4 sm:$0xff]   ;;  %v2062_v3 = vld [vmem:[#allocation3 + $0x28] ss:$16 sps:$4 sm:$0xff]  }
  0x1d   :  { %448 = vmatpush1.bf16.msra.mxu0 %v2002_v46  ;;  %v2071_v7 = vld [vmem:[#allocation3 + $0x4] ss:$16 sps:$4 sm:$0xff]   ;;  %v2073_v8 = vld [vmem:[#allocation3 + $0xc] ss:$16 sps:$4 sm:$0xff]   ;;  %v2075_v11 = vld [vmem:[#allocation3] ss:$16 sps:$4 sm:$0xff]  }
  0x1e   :  { %449 = vmatprep.subr.bf16.mxu0 %v2008_v48  ;;  %409 = vmatpush1.bf16.msra.mxu1 %v2012_v49  ;;  %v2077_v12 = vld [vmem:[#allocation3 + $0x8] ss:$16 sps:$4 sm:$0xff]   ;;  %vm1537_vm5 = vcmask 1024  }
  0x1f   :  { %410 = vmatprep.subr.bf16.mxu1 %v2018_v51 }
  0x21   :  { %450 = vmatpush1.bf16.msra.mxu0 %v2014_v50 }
  0x22   :  { %451 = vmatprep.subr.bf16.mxu0 %v2020_v52  ;;  %411 = vmatpush1.bf16.msra.mxu1 %v2024_v53 }
  0x23   :  { %412 = vmatprep.subr.bf16.mxu1 %v2030_v55 }
  0x25   :  { %452 = vmatpush1.bf16.msra.mxu0 %v2026_v54 }
  0x26   :  { %453 = vmatprep.subr.bf16.mxu0 %v2032_v56  ;;  %413 = vmatpush1.bf16.msra.mxu1 %v2036_v57 }
  0x27   :  { %414 = vmatprep.subr.bf16.mxu1 %v2042_v59 }
  0x29   :  { %454 = vmatpush1.bf16.msra.mxu0 %v2038_v58 }
  0x2a   :  { %455 = vmatprep.subr.bf16.mxu0 %v2044_v60  ;;  %415 = vmatpush1.bf16.msra.mxu1 %v2048_v61 }
  0x2b   :  { %416 = vmatprep.subr.bf16.mxu1 %v2054_v63 }
  0x2d   :  { %456 = vmatpush1.bf16.msra.mxu0 %v2050_v62 }
  0x2e   :  { %457 = vmatprep.subr.bf16.mxu0 %v2056_v0  ;;  %417 = vmatpush1.bf16.msra.mxu1 %v2060_v2 }
  0x2f   :  { %418 = vmatprep.subr.bf16.mxu1 %v2071_v7 }
  0x31   :  { %458 = vmatpush1.bf16.msra.mxu0 %v2062_v3 }
  0x32   :  { %459 = vmatprep.subr.bf16.mxu0 %v2073_v8  ;;  %419 = vmatpush1.bf16.msra.mxu1 %v2075_v11 }
  0x33   :  { %552 = vmatprep.subr.bf16.mxu1 %v1983_v39 }
  0x35   :  { %460 = vmatpush1.bf16.msra.mxu0 %v2077_v12 }
  0x36   :  { %593 = vmatprep.subr.bf16.mxu0 %v1985_v40 }
  0xd8   :  { %v125_v18 = vpop.f32.mrf.mxu0 }
  0xd9   :  { %v1958_v20 = vadd.f32 %v125_v18, %v64_v15 }
  0xda   :  { %v127_v19 = vpop.f32.mrf.mxu0 }
  0xdb   :  { %v1963_v22 = vadd.f32 %v127_v19, %v68_v17 }
  0xdc   :  { %v129_v23 = vpop.f32.mrf.mxu0 }
  0xdd   :  { %v138_v24 = vcombine.low %v1958_v20, %v1963_v22  ;;  %v139_v25 = vcombine.high %v1958_v20, %v1963_v22  ;;  %v1969_v26 = vadd.f32 %v129_v23, %v64_v15  ;;  %v43_v23 = vld [vmem:[%s2481_s4] sm:$0x3] }
  0xde   :  { %v131_v27 = vpop.f32.mrf.mxu0 }
  0xdf   :  { %v1972_v28 = vrot.slane %v138_v24, %v1961_v21  ;;  %v1974_v29 = vadd.f32 %v131_v27, %v68_v17  ;;  %v2127_v24 = vrot.slane %v43_v23, %v47_v10 }
  0xe1   :  { %v1547_v30 = vmul.f32 -1.442695, %v1972_v28  ;;  %v156_v31 = vcombine.low %v1969_v26, %v1974_v29  ;;  %v157_v32 = vcombine.high %v1969_v26, %v1974_v29  ;;  %v188_v33 = vrot.slane %v1972_v28, 2 }
  0xe3   :  { %1666 = vpow2.f32 %v1547_v30 }
  0xe4   :  { %1668 = vtanh.f32 %v188_v33 }
  0xf0   :  { %v1667_v34 = vpop.eup %1666 }
  0xf1   :  { %v185_v35 = vadd.f32 1.0, %v1667_v34  ;;  %v1669_v36 = vpop.eup %1668 }
  0xf3   :  { %1670 = vrcp.f32 %v185_v35 }
 0x100   :  { %v1671_v37 = vpop.eup %1670 }
 0x101   :  { %v192_v38 = vmul.f32 %v1671_v37, %v1669_v36  ;;  %v191_v4 = vmul.f32 0.0, %v1671_v37 }
 0x103   :  { %194 = vrot.lane.b32.xlu0 %v192_v38, %s1888_s2 }
 0x107   :  { %200 = vrot.lane.b32.xlu0 %v1671_v37, %s1888_s2 }
 0x175   :  { %v195_v5 = vpop.permute.xlu0 %194 }
 0x176   :  { %v2068_v6 = vadd.f32 %v195_v5, %v191_v4  ;;  %v154_v5 = vcombine.high %v1972_v28, %v1972_v28 }
 0x178   :  { %1672 = vtanh.f32 %v2068_v6 }
 0x179   :  { %v201_v15 = vpop.permute.xlu0 %200 }
 0x17a   :  { %v202_v16 = vrot.slane %v201_v15, 2 }
 0x185   :  { %v1673_v14 = vpop.eup %1672 }
 0x186   :  { %205 = vrot.lane.b32.xlu1 %v1673_v14, %s1888_s2 }
 0x1f8   :  { %v206_v17 = vpop.permute.xlu1 %205 }
 0x1f9   :  { %v208_v18 = vmul.f32 %v206_v17, %v202_v16 }
 0x1fb   :  { %v1581_v19 = vpack.c.bf16 %v208_v18, %v208_v18  ;;  %v2135_v18 = vrot.slane %v43_v23, %v51_v13 }
 0x1fd   :  { %1582 = vmatmul.mubr.msk.bf16.vlgmr.msra.gmra.mxu1 %vm1580_vm3, %v1581_v19  ;;  %1585 = vmatmul.mubr.msk.bf16.vlgmr.msra.gmra.mxu0 %vm1580_vm3, %v1581_v19 }
 0x1fe   :  { %553 = vmatpush1.bf16.msra.mxu1 %v1987_v41  ;;  %594 = vmatpush1.bf16.msra.mxu0 %v1990_v42 }
 0x1ff   :  { %554 = vmatprep.subr.bf16.mxu1 %v1992_v43  ;;  %595 = vmatprep.subr.bf16.mxu0 %v1994_v44 }
 0x200   :  { %584 = vmatprep.mubr.bf16.mxu1 %v1886_v1  ;;  %625 = vmatprep.mubr.bf16.mxu0 %v1886_v1 }
 0x202   :  { %555 = vmatpush1.bf16.msra.mxu1 %v2000_v45  ;;  %596 = vmatpush1.bf16.msra.mxu0 %v2002_v46 }
 0x203   :  { %556 = vmatprep.subr.bf16.mxu1 %v2006_v47  ;;  %597 = vmatprep.subr.bf16.mxu0 %v2008_v48 }
 0x206   :  { %557 = vmatpush1.bf16.msra.mxu1 %v2012_v49  ;;  %598 = vmatpush1.bf16.msra.mxu0 %v2014_v50 }
 0x207   :  { %558 = vmatprep.subr.bf16.mxu1 %v2018_v51  ;;  %599 = vmatprep.subr.bf16.mxu0 %v2020_v52 }
 0x20a   :  { %559 = vmatpush1.bf16.msra.mxu1 %v2024_v53  ;;  %600 = vmatpush1.bf16.msra.mxu0 %v2026_v54 }
 0x20b   :  { %560 = vmatprep.subr.bf16.mxu1 %v2030_v55  ;;  %601 = vmatprep.subr.bf16.mxu0 %v2032_v56 }
 0x20e   :  { %561 = vmatpush1.bf16.msra.mxu1 %v2036_v57  ;;  %602 = vmatpush1.bf16.msra.mxu0 %v2038_v58 }
 0x20f   :  { %562 = vmatprep.subr.bf16.mxu1 %v2042_v59  ;;  %603 = vmatprep.subr.bf16.mxu0 %v2044_v60 }
 0x212   :  { %563 = vmatpush1.bf16.msra.mxu1 %v2048_v61  ;;  %604 = vmatpush1.bf16.msra.mxu0 %v2050_v62 }
 0x213   :  { %564 = vmatprep.subr.bf16.mxu1 %v2054_v63  ;;  %605 = vmatprep.subr.bf16.mxu0 %v2056_v0 }
 0x216   :  { %565 = vmatpush1.bf16.msra.mxu1 %v2060_v2  ;;  %606 = vmatpush1.bf16.msra.mxu0 %v2062_v3 }
 0x217   :  { %566 = vmatprep.subr.bf16.mxu1 %v2071_v7  ;;  %607 = vmatprep.subr.bf16.mxu0 %v2073_v8 }
 0x21a   :  { %567 = vmatpush1.bf16.msra.mxu1 %v2075_v11  ;;  %608 = vmatpush1.bf16.msra.mxu0 %v2077_v12 }
 0x21b   :  { %700 = vmatprep.subr.bf16.mxu1 %v1983_v39  ;;  %741 = vmatprep.subr.bf16.mxu0 %v1985_v40 }
 0x2bd   :  { %v438_v27 = vpop.f32.mrf.mxu1  ;;  %v479_v30 = vpop.f32.mrf.mxu0 }
 0x2be   :  { %v486_v33 = vadd.f32 %v438_v27, %v2127_v24 }
 0x2bf   :  { %v440_v34 = vpop.f32.mrf.mxu1  ;;  %v481_v35 = vpop.f32.mrf.mxu0 }
 0x2c0   :  { %v1586_v36 = vmul.f32 -1.442695, %v486_v33  ;;  %v512_v37 = vcombine.low %v479_v30, %v481_v35  ;;  %v487_v19 = vadd.f32 %v440_v34, %v2135_v18 }
 0x2c1   :  { %v442_v38 = vpop.f32.mrf.mxu1  ;;  %v483_v4 = vpop.f32.mrf.mxu0 }
 0x2c2   :  { %1674 = vpow2.f32 %v1586_v36  ;;  %v519_v14 = vrot.slane %v512_v37, %v1961_v21 }
 0x2c3   :  { %v443_v15 = vpop.f32.mrf.mxu1  ;;  %v484_v16 = vpop.f32.mrf.mxu0 }
 0x2c4   :  { %v521_v10 = vadd.f32 %v519_v14, %v154_v5  ;;  %v1587_v15 = vmul.f32 -1.442695, %v487_v19 }
 0x2c6   :  { %v1588_v17 = vmul.f32 -1.442695, %v521_v10  ;;  %v529_v33 = vrot.slane %v521_v10, 2 }
 0x2c8   :  { %1676 = vpow2.f32 %v1588_v17 }
 0x2c9   :  { %1678 = vtanh.f32 %v487_v19 }
 0x2cf   :  { %v1675_v27 = vpop.eup %1674 }
 0x2d0   :  { %v494_v30 = vadd.f32 1.0, %v1675_v27 }
 0x2d2   :  { %1680 = vrcp.f32 %v494_v30 }
 0x2d3   :  { %1682 = vtanh.f32 %v529_v33 }
 0x2d5   :  { %v1677_v35 = vpop.eup %1676 }
 0x2d6   :  { %v525_v28 = vadd.f32 1.0, %v1677_v35  ;;  %v1679_v36 = vpop.eup %1678 }
 0x2d8   :  { %1684 = vrcp.f32 %v525_v28 }
 0x2df   :  { %v1681_v37 = vpop.eup %1680 }
 0x2e0   :  { %v502_v38 = vmul.f32 %v1681_v37, %v1679_v36  ;;  %v1683_v4 = vpop.eup %1682  ;;  %v501_v10 = vmul.f32 0.0, %v1681_v37 }
 0x2e2   :  { %504 = vrot.lane.b32.xlu0 %v502_v38, %s1888_s2 }
 0x2e5   :  { %v1685_v9 = vpop.eup %1684 }
 0x2e6   :  { %v533_v13 = vmul.f32 %v1685_v9, %v1683_v4  ;;  %v532_v23 = vmul.f32 %v1685_v9, %v2068_v6 }
 0x2e8   :  { %535 = vrot.lane.b32.xlu1 %v533_v13, %s1888_s2 }
 0x2ec   :  { %541 = vrot.lane.b32.xlu1 %v1685_v9, %s1888_s2 }
 0x354   :  { %v505_v16 = vpop.permute.xlu0 %504 }
 0x355   :  { %v2146_v27 = vadd.f32 %v505_v16, %v501_v10 }
 0x35a   :  { %v536_v34 = vpop.permute.xlu1 %535 }
 0x35b   :  { %v2142_v5 = vadd.f32 %v536_v34, %v532_v23 }
 0x35d   :  { %1686 = vtanh.f32 %v2142_v5 }
 0x35e   :  { %1688 = vpow2.f32 %v1587_v15  ;;  %v542_v6 = vpop.permute.xlu1 %541 }
 0x35f   :  { %1690 = vtanh.f32 %v2146_v27  ;;  %v543_v35 = vrot.slane %v542_v6, 2 }
 0x36a   :  { %v1687_v14 = vpop.eup %1686 }
 0x36b   :  { %546 = vrot.lane.b32.xlu0 %v1687_v14, %s1888_s2  ;;  %v1689_v17 = vpop.eup %1688 }
 0x36c   :  { %v495_v30 = vadd.f32 1.0, %v1689_v17  ;;  %v1691_v33 = vpop.eup %1690 }
 0x36e   :  { %1692 = vrcp.f32 %v495_v30  ;;  %v2189_v30 = vrot.slane %v139_v25, %v1961_v21 }
 0x37b   :  { %v1693_v28 = vpop.eup %1692 }
 0x37c   :  { %v509_v38 = vmul.f32 %v1693_v28, %v1691_v33 }
 0x3dd   :  { %v547_v36 = vpop.permute.xlu0 %546 }
 0x3de   :  { %v549_v4 = vmul.f32 %v547_v36, %v543_v35 }
 0x3e0   :  { %v550_v9 = vsel %vm209_vm2, %v549_v4, %v509_v38 }
 0x3e1   :  { %v551_v19 = vpack.c.bf16 %v550_v9, %v550_v9 }
 0x3e3   :  { %585 = vmatmul.mubr.bf16.vlgmr.msra.gmra.mxu1 %v551_v19  ;;  %626 = vmatmul.mubr.bf16.vlgmr.msra.gmra.mxu0 %v551_v19 }
 0x3e4   :  { %701 = vmatpush1.bf16.msra.mxu1 %v1987_v41  ;;  %742 = vmatpush1.bf16.msra.mxu0 %v1990_v42 }
 0x3e5   :  { %702 = vmatprep.subr.bf16.mxu1 %v1992_v43  ;;  %743 = vmatprep.subr.bf16.mxu0 %v1994_v44 }
 0x3e6   :  { %732 = vmatprep.mubr.bf16.mxu1 %v1886_v1  ;;  %773 = vmatprep.mubr.bf16.mxu0 %v1886_v1 }
 0x3e8   :  { %703 = vmatpush1.bf16.msra.mxu1 %v2000_v45  ;;  %744 = vmatpush1.bf16.msra.mxu0 %v2002_v46 }
 0x3e9   :  { %704 = vmatprep.subr.bf16.mxu1 %v2006_v47  ;;  %745 = vmatprep.subr.bf16.mxu0 %v2008_v48 }
 0x3ec   :  { %705 = vmatpush1.bf16.msra.mxu1 %v2012_v49  ;;  %746 = vmatpush1.bf16.msra.mxu0 %v2014_v50 }
 0x3ed   :  { %706 = vmatprep.subr.bf16.mxu1 %v2018_v51  ;;  %747 = vmatprep.subr.bf16.mxu0 %v2020_v52 }
 0x3f0   :  { %707 = vmatpush1.bf16.msra.mxu1 %v2024_v53  ;;  %748 = vmatpush1.bf16.msra.mxu0 %v2026_v54 }
 0x3f1   :  { %708 = vmatprep.subr.bf16.mxu1 %v2030_v55  ;;  %749 = vmatprep.subr.bf16.mxu0 %v2032_v56 }
 0x3f4   :  { %709 = vmatpush1.bf16.msra.mxu1 %v2036_v57  ;;  %750 = vmatpush1.bf16.msra.mxu0 %v2038_v58 }
 0x3f5   :  { %710 = vmatprep.subr.bf16.mxu1 %v2042_v59  ;;  %751 = vmatprep.subr.bf16.mxu0 %v2044_v60 }
 0x3f8   :  { %711 = vmatpush1.bf16.msra.mxu1 %v2048_v61  ;;  %752 = vmatpush1.bf16.msra.mxu0 %v2050_v62 }
 0x3f9   :  { %712 = vmatprep.subr.bf16.mxu1 %v2054_v63  ;;  %753 = vmatprep.subr.bf16.mxu0 %v2056_v0 }
 0x3fc   :  { %713 = vmatpush1.bf16.msra.mxu1 %v2060_v2  ;;  %754 = vmatpush1.bf16.msra.mxu0 %v2062_v3 }
 0x3fd   :  { %714 = vmatprep.subr.bf16.mxu1 %v2071_v7  ;;  %755 = vmatprep.subr.bf16.mxu0 %v2073_v8 }
 0x400   :  { %715 = vmatpush1.bf16.msra.mxu1 %v2075_v11  ;;  %756 = vmatpush1.bf16.msra.mxu0 %v2077_v12 }
 0x401   :  { %848 = vmatprep.subr.bf16.mxu1 %v1983_v39  ;;  %889 = vmatprep.subr.bf16.mxu0 %v1985_v40 }
 0x4a3   :  { %v586_v37 = vpop.f32.mrf.mxu1  ;;  %v627_v13 = vpop.f32.mrf.mxu0 }
 0x4a4   :  { %v634_v23 = vadd.f32 %v586_v37, %v2127_v24 }
 0x4a5   :  { %v588_v34 = vpop.f32.mrf.mxu1  ;;  %v629_v14 = vpop.f32.mrf.mxu0 }
 0x4a6   :  { %v1589_v15 = vmul.f32 -1.442695, %v634_v23  ;;  %v660_v16 = vcombine.low %v627_v13, %v629_v14  ;;  %v635_v38 = vadd.f32 %v588_v34, %v2135_v18 }
 0x4a7   :  { %v590_v10 = vpop.f32.mrf.mxu1  ;;  %v631_v17 = vpop.f32.mrf.mxu0 }
 0x4a8   :  { %1694 = vpow2.f32 %v1589_v15  ;;  %v667_v6 = vrot.slane %v660_v16, %v1961_v21 }
 0x4a9   :  { %v591_v33 = vpop.f32.mrf.mxu1  ;;  %v632_v35 = vpop.f32.mrf.mxu0 }
 0x4aa   :  { %v669_v28 = vadd.f32 %v667_v6, %v2189_v30  ;;  %v1590_v6 = vmul.f32 -1.442695, %v635_v38 }
 0x4ac   :  { %v1591_v36 = vmul.f32 -1.442695, %v669_v28  ;;  %v677_v19 = vrot.slane %v669_v28, 2 }
 0x4ae   :  { %1696 = vpow2.f32 %v1591_v36 }
 0x4af   :  { %1698 = vtanh.f32 %v635_v38 }
 0x4b5   :  { %v1695_v4 = vpop.eup %1694 }
 0x4b6   :  { %v642_v9 = vadd.f32 1.0, %v1695_v4 }
 0x4b8   :  { %1700 = vrcp.f32 %v642_v9 }
 0x4b9   :  { %1702 = vtanh.f32 %v677_v19 }
 0x4bb   :  { %v1697_v37 = vpop.eup %1696 }
 0x4bc   :  { %v673_v20 = vadd.f32 1.0, %v1697_v37  ;;  %v1699_v22 = vpop.eup %1698 }
 0x4be   :  { %1704 = vrcp.f32 %v673_v20 }
 0x4c5   :  { %v1701_v25 = vpop.eup %1700 }
 0x4c6   :  { %v650_v13 = vmul.f32 %v1701_v25, %v1699_v22  ;;  %v1703_v23 = vpop.eup %1702  ;;  %v649_v35 = vmul.f32 %v1701_v25, %v2146_v27 }
 0x4c8   :  { %652 = vrot.lane.b32.xlu0 %v650_v13, %s1888_s2 }
 0x4cb   :  { %v1705_v14 = vpop.eup %1704 }
 0x4cc   :  { %v681_v15 = vmul.f32 %v1705_v14, %v1703_v23  ;;  %v680_v34 = vmul.f32 %v1705_v14, %v2142_v5 }
 0x4ce   :  { %683 = vrot.lane.b32.xlu1 %v681_v15, %s1888_s2 }
 0x4d2   :  { %689 = vrot.lane.b32.xlu1 %v1705_v14, %s1888_s2 }
 0x53a   :  { %v653_v33 = vpop.permute.xlu0 %652 }
 0x53b   :  { %v2203_v36 = vadd.f32 %v653_v33, %v649_v35  ;;  %v155_v35 = vcombine.high %v2189_v30, %v2189_v30 }
 0x540   :  { %v684_v16 = vpop.permute.xlu1 %683 }
 0x541   :  { %v2198_v10 = vadd.f32 %v684_v16, %v680_v34 }
 0x543   :  { %1706 = vtanh.f32 %v2198_v10 }
 0x544   :  { %1708 = vpow2.f32 %v1590_v6  ;;  %v690_v5 = vpop.permute.xlu1 %689 }
 0x545   :  { %1710 = vtanh.f32 %v2203_v36  ;;  %v691_v19 = vrot.slane %v690_v5, 2 }
 0x550   :  { %v1707_v17 = vpop.eup %1706 }
 0x551   :  { %694 = vrot.lane.b32.xlu0 %v1707_v17, %s1888_s2  ;;  %v1709_v28 = vpop.eup %1708 }
 0x552   :  { %v643_v4 = vadd.f32 1.0, %v1709_v28  ;;  %v1711_v9 = vpop.eup %1710 }
 0x554   :  { %1712 = vrcp.f32 %v643_v4 }
 0x561   :  { %v1713_v37 = vpop.eup %1712 }
 0x562   :  { %v657_v22 = vmul.f32 %v1713_v37, %v1711_v9 }
 0x5c3   :  { %v695_v20 = vpop.permute.xlu0 %694 }
 0x5c4   :  { %v697_v13 = vmul.f32 %v695_v20, %v691_v19 }
 0x5c6   :  { %v698_v38 = vsel %vm209_vm2, %v697_v13, %v657_v22 }
 0x5c7   :  { %v699_v23 = vpack.c.bf16 %v698_v38, %v698_v38 }
 0x5c9   :  { %733 = vmatmul.mubr.bf16.vlgmr.msra.gmra.mxu1 %v699_v23  ;;  %774 = vmatmul.mubr.bf16.vlgmr.msra.gmra.mxu0 %v699_v23 }
 0x5ca   :  { %849 = vmatpush1.bf16.msra.mxu1 %v1987_v41  ;;  %890 = vmatpush1.bf16.msra.mxu0 %v1990_v42 }
 0x5cb   :  { %850 = vmatprep.subr.bf16.mxu1 %v1992_v43  ;;  %891 = vmatprep.subr.bf16.mxu0 %v1994_v44 }
 0x5cc   :  { %880 = vmatprep.mubr.bf16.mxu1 %v1886_v1  ;;  %921 = vmatprep.mubr.bf16.mxu0 %v1886_v1 }
 0x5ce   :  { %851 = vmatpush1.bf16.msra.mxu1 %v2000_v45  ;;  %892 = vmatpush1.bf16.msra.mxu0 %v2002_v46 }
 0x5cf   :  { %852 = vmatprep.subr.bf16.mxu1 %v2006_v47  ;;  %893 = vmatprep.subr.bf16.mxu0 %v2008_v48 }
 0x5d2   :  { %853 = vmatpush1.bf16.msra.mxu1 %v2012_v49  ;;  %894 = vmatpush1.bf16.msra.mxu0 %v2014_v50 }
 0x5d3   :  { %854 = vmatprep.subr.bf16.mxu1 %v2018_v51  ;;  %895 = vmatprep.subr.bf16.mxu0 %v2020_v52 }
 0x5d6   :  { %855 = vmatpush1.bf16.msra.mxu1 %v2024_v53  ;;  %896 = vmatpush1.bf16.msra.mxu0 %v2026_v54 }
 0x5d7   :  { %856 = vmatprep.subr.bf16.mxu1 %v2030_v55  ;;  %897 = vmatprep.subr.bf16.mxu0 %v2032_v56 }
 0x5da   :  { %857 = vmatpush1.bf16.msra.mxu1 %v2036_v57  ;;  %898 = vmatpush1.bf16.msra.mxu0 %v2038_v58 }
 0x5db   :  { %858 = vmatprep.subr.bf16.mxu1 %v2042_v59  ;;  %899 = vmatprep.subr.bf16.mxu0 %v2044_v60 }
 0x5de   :  { %859 = vmatpush1.bf16.msra.mxu1 %v2048_v61  ;;  %900 = vmatpush1.bf16.msra.mxu0 %v2050_v62 }
 0x5df   :  { %860 = vmatprep.subr.bf16.mxu1 %v2054_v63  ;;  %901 = vmatprep.subr.bf16.mxu0 %v2056_v0 }
 0x5e2   :  { %861 = vmatpush1.bf16.msra.mxu1 %v2060_v2  ;;  %902 = vmatpush1.bf16.msra.mxu0 %v2062_v3 }
 0x5e3   :  { %862 = vmatprep.subr.bf16.mxu1 %v2071_v7  ;;  %903 = vmatprep.subr.bf16.mxu0 %v2073_v8 }
 0x5e6   :  { %863 = vmatpush1.bf16.msra.mxu1 %v2075_v11  ;;  %904 = vmatpush1.bf16.msra.mxu0 %v2077_v12 }
 0x5e7   :  { %996 = vmatprep.subr.bf16.mxu1 %v1983_v39  ;;  %1037 = vmatprep.subr.bf16.mxu0 %v1985_v40 }
 0x689   :  { %v734_v27 = vpop.f32.mrf.mxu1  ;;  %v775_v25 = vpop.f32.mrf.mxu0 }
 0x68a   :  { %v782_v14 = vadd.f32 %v734_v27, %v2127_v24 }
 0x68b   :  { %v736_v15 = vpop.f32.mrf.mxu1  ;;  %v777_v34 = vpop.f32.mrf.mxu0 }
 0x68c   :  { %v1592_v16 = vmul.f32 -1.442695, %v782_v14  ;;  %v808_v17 = vcombine.low %v775_v25, %v777_v34  ;;  %v783_v37 = vadd.f32 %v736_v15, %v2135_v18 }
 0x68d   :  { %v738_v6 = vpop.f32.mrf.mxu1  ;;  %v779_v33 = vpop.f32.mrf.mxu0 }
 0x68e   :  { %1714 = vpow2.f32 %v1592_v16  ;;  %v815_v28 = vrot.slane %v808_v17, %v1961_v21 }
 0x68f   :  { %v739_v4 = vpop.f32.mrf.mxu1  ;;  %v780_v5 = vpop.f32.mrf.mxu0 }
 0x690   :  { %v817_v9 = vadd.f32 %v815_v28, %v155_v35  ;;  %v1593_v35 = vmul.f32 -1.442695, %v783_v37 }
 0x692   :  { %v1594_v19 = vmul.f32 -1.442695, %v817_v9  ;;  %v825_v13 = vrot.slane %v817_v9, 2 }
 0x694   :  { %1716 = vpow2.f32 %v1594_v19 }
 0x695   :  { %1718 = vtanh.f32 %v783_v37 }
 0x69b   :  { %v1715_v20 = vpop.eup %1714 }
 0x69c   :  { %v790_v22 = vadd.f32 1.0, %v1715_v20 }
 0x69e   :  { %1720 = vrcp.f32 %v790_v22 }
 0x69f   :  { %1722 = vtanh.f32 %v825_v13 }
 0x6a1   :  { %v1717_v38 = vpop.eup %1716 }
 0x6a2   :  { %v821_v23 = vadd.f32 1.0, %v1717_v38  ;;  %v1719_v27 = vpop.eup %1718 }
 0x6a4   :  { %1724 = vrcp.f32 %v821_v23 }
 0x6ab   :  { %v1721_v30 = vpop.eup %1720 }
 0x6ac   :  { %v798_v25 = vmul.f32 %v1721_v30, %v1719_v27  ;;  %v1723_v14 = vpop.eup %1722  ;;  %v797_v4 = vmul.f32 %v1721_v30, %v2203_v36 }
 0x6ae   :  { %800 = vrot.lane.b32.xlu0 %v798_v25, %s1888_s2 }
 0x6b1   :  { %v1725_v34 = vpop.eup %1724 }
 0x6b2   :  { %v829_v16 = vmul.f32 %v1725_v34, %v1723_v14  ;;  %v828_v15 = vmul.f32 %v1725_v34, %v2198_v10 }
 0x6b4   :  { %831 = vrot.lane.b32.xlu1 %v829_v16, %s1888_s2 }
 0x6b8   :  { %837 = vrot.lane.b32.xlu1 %v1725_v34, %s1888_s2 }
 0x720   :  { %v801_v28 = vpop.permute.xlu0 %800 }
 0x721   :  { %v2255_v9 = vadd.f32 %v801_v28, %v797_v4  ;;  %v2298_v28 = vrot.slane %v156_v31, %v1961_v21 }
 0x726   :  { %v832_v17 = vpop.permute.xlu1 %831 }
 0x727   :  { %v2250_v6 = vadd.f32 %v832_v17, %v828_v15 }
 0x729   :  { %1726 = vtanh.f32 %v2250_v6 }
 0x72a   :  { %1728 = vpow2.f32 %v1593_v35  ;;  %v838_v10 = vpop.permute.xlu1 %837 }
 0x72b   :  { %1730 = vtanh.f32 %v2255_v9  ;;  %v839_v22 = vrot.slane %v838_v10, 2 }
 0x736   :  { %v1727_v33 = vpop.eup %1726 }
 0x737   :  { %842 = vrot.lane.b32.xlu0 %v1727_v33, %s1888_s2  ;;  %v1729_v5 = vpop.eup %1728 }
 0x738   :  { %v791_v19 = vadd.f32 1.0, %v1729_v5  ;;  %v1731_v20 = vpop.eup %1730 }
 0x73a   :  { %1732 = vrcp.f32 %v791_v19 }
 0x747   :  { %v1733_v13 = vpop.eup %1732 }
 0x748   :  { %v805_v23 = vmul.f32 %v1733_v13, %v1731_v20 }
 0x7a9   :  { %v843_v38 = vpop.permute.xlu0 %842 }
 0x7aa   :  { %v845_v27 = vmul.f32 %v843_v38, %v839_v22 }
 0x7ac   :  { %v846_v37 = vsel %vm209_vm2, %v845_v27, %v805_v23 }
 0x7ad   :  { %v847_v25 = vpack.c.bf16 %v846_v37, %v846_v37 }
 0x7af   :  { %881 = vmatmul.mubr.bf16.vlgmr.msra.gmra.mxu1 %v847_v25  ;;  %922 = vmatmul.mubr.bf16.vlgmr.msra.gmra.mxu0 %v847_v25 }
 0x7b0   :  { %997 = vmatpush1.bf16.msra.mxu1 %v1987_v41  ;;  %1038 = vmatpush1.bf16.msra.mxu0 %v1990_v42 }
 0x7b1   :  { %998 = vmatprep.subr.bf16.mxu1 %v1992_v43  ;;  %1039 = vmatprep.subr.bf16.mxu0 %v1994_v44 }
 0x7b2   :  { %1028 = vmatprep.mubr.bf16.mxu1 %v1886_v1  ;;  %1069 = vmatprep.mubr.bf16.mxu0 %v1886_v1 }
 0x7b4   :  { %999 = vmatpush1.bf16.msra.mxu1 %v2000_v45  ;;  %1040 = vmatpush1.bf16.msra.mxu0 %v2002_v46 }
 0x7b5   :  { %1000 = vmatprep.subr.bf16.mxu1 %v2006_v47  ;;  %1041 = vmatprep.subr.bf16.mxu0 %v2008_v48 }
 0x7b8   :  { %1001 = vmatpush1.bf16.msra.mxu1 %v2012_v49  ;;  %1042 = vmatpush1.bf16.msra.mxu0 %v2014_v50 }
 0x7b9   :  { %1002 = vmatprep.subr.bf16.mxu1 %v2018_v51  ;;  %1043 = vmatprep.subr.bf16.mxu0 %v2020_v52 }
 0x7bc   :  { %1003 = vmatpush1.bf16.msra.mxu1 %v2024_v53  ;;  %1044 = vmatpush1.bf16.msra.mxu0 %v2026_v54 }
 0x7bd   :  { %1004 = vmatprep.subr.bf16.mxu1 %v2030_v55  ;;  %1045 = vmatprep.subr.bf16.mxu0 %v2032_v56 }
 0x7c0   :  { %1005 = vmatpush1.bf16.msra.mxu1 %v2036_v57  ;;  %1046 = vmatpush1.bf16.msra.mxu0 %v2038_v58 }
 0x7c1   :  { %1006 = vmatprep.subr.bf16.mxu1 %v2042_v59  ;;  %1047 = vmatprep.subr.bf16.mxu0 %v2044_v60 }
 0x7c4   :  { %1007 = vmatpush1.bf16.msra.mxu1 %v2048_v61  ;;  %1048 = vmatpush1.bf16.msra.mxu0 %v2050_v62 }
 0x7c5   :  { %1008 = vmatprep.subr.bf16.mxu1 %v2054_v63  ;;  %1049 = vmatprep.subr.bf16.mxu0 %v2056_v0 }
 0x7c8   :  { %1009 = vmatpush1.bf16.msra.mxu1 %v2060_v2  ;;  %1050 = vmatpush1.bf16.msra.mxu0 %v2062_v3 }
 0x7c9   :  { %1010 = vmatprep.subr.bf16.mxu1 %v2071_v7  ;;  %1051 = vmatprep.subr.bf16.mxu0 %v2073_v8 }
 0x7cc   :  { %1011 = vmatpush1.bf16.msra.mxu1 %v2075_v11  ;;  %1052 = vmatpush1.bf16.msra.mxu0 %v2077_v12 }
 0x7cd   :  { %1144 = vmatprep.subr.bf16.mxu1 %v1983_v39  ;;  %1185 = vmatprep.subr.bf16.mxu0 %v1985_v40 }
 0x86f   :  { %v882_v36 = vpop.f32.mrf.mxu1  ;;  %v923_v30 = vpop.f32.mrf.mxu0 }
 0x870   :  { %v930_v14 = vadd.f32 %v882_v36, %v2127_v24 }
 0x871   :  { %v884_v34 = vpop.f32.mrf.mxu1  ;;  %v925_v16 = vpop.f32.mrf.mxu0 }
 0x872   :  { %v1595_v15 = vmul.f32 -1.442695, %v930_v14  ;;  %v956_v17 = vcombine.low %v923_v30, %v925_v16  ;;  %v931_v22 = vadd.f32 %v884_v34, %v2135_v18 }
 0x873   :  { %v886_v33 = vpop.f32.mrf.mxu1  ;;  %v927_v35 = vpop.f32.mrf.mxu0 }
 0x874   :  { %1734 = vpow2.f32 %v1595_v15  ;;  %v963_v4 = vrot.slane %v956_v17, %v1961_v21  ;;  %v1596_v35 = vmul.f32 -1.442695, %v931_v22 }
 0x875   :  { %v887_v5 = vpop.f32.mrf.mxu1  ;;  %v928_v19 = vpop.f32.mrf.mxu0 }
 0x876   :  { %v965_v10 = vadd.f32 %v963_v4, %v2298_v28 }
 0x878   :  { %v1597_v20 = vmul.f32 -1.442695, %v965_v10  ;;  %v973_v23 = vrot.slane %v965_v10, 2 }
 0x87a   :  { %1736 = vpow2.f32 %v1597_v20 }
 0x87b   :  { %1738 = vtanh.f32 %v931_v22 }
 0x881   :  { %v1735_v13 = vpop.eup %1734 }
 0x882   :  { %v938_v38 = vadd.f32 1.0, %v1735_v13 }
 0x884   :  { %1740 = vrcp.f32 %v938_v38 }
 0x885   :  { %1742 = vtanh.f32 %v973_v23 }
 0x887   :  { %v1737_v27 = vpop.eup %1736 }
 0x888   :  { %v969_v37 = vadd.f32 1.0, %v1737_v27  ;;  %v1739_v31 = vpop.eup %1738 }
 0x88a   :  { %1744 = vrcp.f32 %v969_v37 }
 0x891   :  { %v1741_v25 = vpop.eup %1740 }
 0x892   :  { %v946_v36 = vmul.f32 %v1741_v25, %v1739_v31  ;;  %v1743_v30 = vpop.eup %1742  ;;  %v945_v5 = vmul.f32 %v1741_v25, %v2255_v9 }
 0x894   :  { %948 = vrot.lane.b32.xlu0 %v946_v36, %s1888_s2 }
 0x897   :  { %v1745_v14 = vpop.eup %1744 }
 0x898   :  { %v977_v16 = vmul.f32 %v1745_v14, %v1743_v30  ;;  %v976_v34 = vmul.f32 %v1745_v14, %v2250_v6 }
 0x89a   :  { %979 = vrot.lane.b32.xlu1 %v977_v16, %s1888_s2 }
 0x89e   :  { %985 = vrot.lane.b32.xlu1 %v1745_v14, %s1888_s2 }
 0x906   :  { %v949_v4 = vpop.permute.xlu0 %948 }
 0x907   :  { %v2312_v10 = vadd.f32 %v949_v4, %v945_v5 }
 0x90c   :  { %v980_v15 = vpop.permute.xlu1 %979 }
 0x90d   :  { %v2307_v17 = vadd.f32 %v980_v15, %v976_v34 }
 0x90f   :  { %1746 = vtanh.f32 %v2307_v17 }
 0x910   :  { %1748 = vpow2.f32 %v1596_v35  ;;  %v986_v6 = vpop.permute.xlu1 %985 }
 0x911   :  { %1750 = vtanh.f32 %v2312_v10  ;;  %v987_v38 = vrot.slane %v986_v6, 2  ;;  %v2371_v6 = vld [vmem:[#allocation3 + $0xc4] ss:$16 sps:$4 sm:$0xff]  }
 0x91c   :  { %v1747_v33 = vpop.eup %1746 }
 0x91d   :  { %990 = vrot.lane.b32.xlu0 %v1747_v33, %s1888_s2  ;;  %v1749_v19 = vpop.eup %1748 }
 0x91e   :  { %v939_v20 = vadd.f32 1.0, %v1749_v19  ;;  %v1751_v13 = vpop.eup %1750 }
 0x920   :  { %1752 = vrcp.f32 %v939_v20  ;;  %v1831_v20 = vld [vmem:[#allocation3 + $0xe8] ss:$16 sps:$4 sm:$0xff]  }
 0x92d   :  { %v1753_v23 = vpop.eup %1752 }
 0x92e   :  { %v953_v37 = vmul.f32 %v1753_v23, %v1751_v13  ;;  %v1833_v13 = vld [vmem:[#allocation3 + $0xcc] ss:$16 sps:$4 sm:$0xff]   ;;  %v1835_v23 = vld [vmem:[#allocation3 + $0xc8] ss:$16 sps:$4 sm:$0xff]  }
 0x98f   :  { %v991_v27 = vpop.permute.xlu0 %990 }
 0x990   :  { %v993_v31 = vmul.f32 %v991_v27, %v987_v38  ;;  %v2376_v38 = vld [vmem:[#allocation3 + $0xc0] ss:$16 sps:$4 sm:$0xff]   ;;  %v2379_v27 = vld [vmem:[#allocation3 + $0xa4] ss:$16 sps:$4 sm:$0xff]  }
 0x992   :  { %v994_v22 = vsel %vm209_vm2, %v993_v31, %v953_v37  ;;  %v1837_v37 = vld [vmem:[#allocation3 + $0xac] ss:$16 sps:$4 sm:$0xff]   ;;  %v2382_v31 = vld [vmem:[#allocation3 + $0xa0] ss:$16 sps:$4 sm:$0xff]  }
 0x993   :  { %v995_v36 = vpack.c.bf16 %v994_v22, %v994_v22  ;;  %v1839_v22 = vld [vmem:[#allocation3 + $0xa8] ss:$16 sps:$4 sm:$0xff]  }
 0x995   :  { %1029 = vmatmul.mubr.bf16.vlgmr.msra.gmra.mxu1 %v995_v36  ;;  %1070 = vmatmul.mubr.bf16.vlgmr.msra.gmra.mxu0 %v995_v36  ;;  %v2385_v36 = vld [vmem:[#allocation3 + $0x84] ss:$16 sps:$4 sm:$0xff]  }
 0x996   :  { %1145 = vmatpush1.bf16.msra.mxu1 %v1987_v41  ;;  %1186 = vmatpush1.bf16.msra.mxu0 %v1990_v42 }
 0x997   :  { %1146 = vmatprep.subr.bf16.mxu1 %v1992_v43  ;;  %1187 = vmatprep.subr.bf16.mxu0 %v1994_v44 }
 0x998   :  { %1176 = vmatprep.mubr.bf16.mxu1 %v1886_v1  ;;  %1217 = vmatprep.mubr.bf16.mxu0 %v1886_v1 }
 0x99a   :  { %1147 = vmatpush1.bf16.msra.mxu1 %v2000_v45  ;;  %1188 = vmatpush1.bf16.msra.mxu0 %v2002_v46 }
 0x99b   :  { %1148 = vmatprep.subr.bf16.mxu1 %v2006_v47  ;;  %1189 = vmatprep.subr.bf16.mxu0 %v2008_v48 }
 0x99e   :  { %1149 = vmatpush1.bf16.msra.mxu1 %v2012_v49  ;;  %1190 = vmatpush1.bf16.msra.mxu0 %v2014_v50  ;;  %v172_v50 = vcombine.high %v2298_v28, %v2298_v28 }
 0x99f   :  { %1150 = vmatprep.subr.bf16.mxu1 %v2018_v51  ;;  %1191 = vmatprep.subr.bf16.mxu0 %v2020_v52 }
 0x9a2   :  { %1151 = vmatpush1.bf16.msra.mxu1 %v2024_v53  ;;  %1192 = vmatpush1.bf16.msra.mxu0 %v2026_v54 }
 0x9a3   :  { %1152 = vmatprep.subr.bf16.mxu1 %v2030_v55  ;;  %1193 = vmatprep.subr.bf16.mxu0 %v2032_v56 }
 0x9a6   :  { %1153 = vmatpush1.bf16.msra.mxu1 %v2036_v57  ;;  %1194 = vmatpush1.bf16.msra.mxu0 %v2038_v58 }
 0x9a7   :  { %1154 = vmatprep.subr.bf16.mxu1 %v2042_v59  ;;  %1195 = vmatprep.subr.bf16.mxu0 %v2044_v60 }
 0x9aa   :  { %1155 = vmatpush1.bf16.msra.mxu1 %v2048_v61  ;;  %1196 = vmatpush1.bf16.msra.mxu0 %v2050_v62 }
 0x9ab   :  { %1156 = vmatprep.subr.bf16.mxu1 %v2054_v63  ;;  %1197 = vmatprep.subr.bf16.mxu0 %v2056_v0 }
 0x9ae   :  { %1157 = vmatpush1.bf16.msra.mxu1 %v2060_v2  ;;  %1198 = vmatpush1.bf16.msra.mxu0 %v2062_v3 }
 0x9af   :  { %1158 = vmatprep.subr.bf16.mxu1 %v2071_v7  ;;  %1199 = vmatprep.subr.bf16.mxu0 %v2073_v8 }
 0x9b2   :  { %1159 = vmatpush1.bf16.msra.mxu1 %v2075_v11  ;;  %1200 = vmatpush1.bf16.msra.mxu0 %v2077_v12 }
 0x9b3   :  { %1292 = vmatprep.subr.bf16.mxu1 %v1983_v39  ;;  %1333 = vmatprep.subr.bf16.mxu0 %v1985_v40 }
 0xa55   :  { %v1030_v41 = vpop.f32.mrf.mxu1  ;;  %v1071_v42 = vpop.f32.mrf.mxu0 }
 0xa56   :  { %v1078_v43 = vadd.f32 %v1030_v41, %v2127_v24  ;;  %v1841_v41 = vld [vmem:[#allocation3 + $0x8c] ss:$16 sps:$4 sm:$0xff]  }
 0xa57   :  { %v1032_v44 = vpop.f32.mrf.mxu1  ;;  %v1073_v45 = vpop.f32.mrf.mxu0 }
 0xa58   :  { %v1598_v46 = vmul.f32 -1.442695, %v1078_v43  ;;  %v1104_v47 = vcombine.low %v1071_v42, %v1073_v45  ;;  %v1079_v54 = vadd.f32 %v1032_v44, %v2135_v18  ;;  %v2388_v42 = vld [vmem:[#allocation3 + $0x80] ss:$16 sps:$4 sm:$0xff]   ;;  %v1843_v43 = vld [vmem:[#allocation3 + $0x88] ss:$16 sps:$4 sm:$0xff]  }
 0xa59   :  { %v1034_v48 = vpop.f32.mrf.mxu1  ;;  %v1075_v49 = vpop.f32.mrf.mxu0  ;;  %v2391_v44 = vld [vmem:[#allocation3 + $0x64] ss:$16 sps:$4 sm:$0xff]   ;;  %v1845_v45 = vld [vmem:[#allocation3 + $0x6c] ss:$16 sps:$4 sm:$0xff]  }
 0xa5a   :  { %1754 = vpow2.f32 %v1598_v46  ;;  %v1111_v51 = vrot.slane %v1104_v47, %v1961_v21  ;;  %v1599_v12 = vmul.f32 -1.442695, %v1079_v54  ;;  %v2394_v46 = vld [vmem:[#allocation3 + $0x60] ss:$16 sps:$4 sm:$0xff]   ;;  %v1847_v47 = vld [vmem:[#allocation3 + $0x68] ss:$16 sps:$4 sm:$0xff]  }
 0xa5b   :  { %v1035_v52 = vpop.f32.mrf.mxu1  ;;  %v1076_v39 = vpop.f32.mrf.mxu0  ;;  %v2397_v48 = vld [vmem:[#allocation3 + $0x44] ss:$16 sps:$4 sm:$0xff]   ;;  %v1849_v49 = vld [vmem:[#allocation3 + $0x4c] ss:$16 sps:$4 sm:$0xff]  }
 0xa5c   :  { %v1113_v53 = vadd.f32 %v1111_v51, %v172_v50  ;;  %v2400_v50 = vld [vmem:[#allocation3 + $0x40] ss:$16 sps:$4 sm:$0xff]   ;;  %v1851_v51 = vld [vmem:[#allocation3 + $0x48] ss:$16 sps:$4 sm:$0xff]   ;;  %v2403_v52 = vld [vmem:[#allocation3 + $0x24] ss:$16 sps:$4 sm:$0xff]  }
 0xa5d   :  { %v1853_v39 = vld [vmem:[#allocation3 + $0x2c] ss:$16 sps:$4 sm:$0xff]  }
 0xa5e   :  { %v1600_v40 = vmul.f32 -1.442695, %v1113_v53  ;;  %v1121_v57 = vrot.slane %v1113_v53, 2  ;;  %v2406_v53 = vld [vmem:[#allocation3 + $0x20] ss:$16 sps:$4 sm:$0xff]  }
 0xa60   :  { %1756 = vpow2.f32 %v1600_v40  ;;  %v1855_v40 = vld [vmem:[#allocation3 + $0x28] ss:$16 sps:$4 sm:$0xff]  }
 0xa61   :  { %1758 = vtanh.f32 %v1079_v54  ;;  %v2409_v54 = vld [vmem:[#allocation3 + $0x4] ss:$16 sps:$4 sm:$0xff]  }
 0xa67   :  { %v1755_v55 = vpop.eup %1754 }
 0xa68   :  { %v1086_v56 = vadd.f32 1.0, %v1755_v55  ;;  %v1857_v55 = vld [vmem:[#allocation3 + $0xc] ss:$16 sps:$4 sm:$0xff]  }
 0xa6a   :  { %1760 = vrcp.f32 %v1086_v56  ;;  %v2412_v56 = vld [vmem:[#allocation3] ss:$16 sps:$4 sm:$0xff]  }
 0xa6b   :  { %1762 = vtanh.f32 %v1121_v57  ;;  %v1859_v57 = vld [vmem:[#allocation3 + $0x8] ss:$16 sps:$4 sm:$0xff]  }
 0xa6d   :  { %v1757_v58 = vpop.eup %1756 }
 0xa6e   :  { %v1117_v59 = vadd.f32 1.0, %v1757_v58  ;;  %v1759_v60 = vpop.eup %1758  ;;  %v1860_v58 = vld [vmem:[#allocation3 + $0xe4] ss:$16 sps:$4 sm:$0xff]  }
 0xa70   :  { %1764 = vrcp.f32 %v1117_v59 }
 0xa77   :  { %v1761_v61 = vpop.eup %1760 }
 0xa78   :  { %v1094_v62 = vmul.f32 %v1761_v61, %v1759_v60  ;;  %v1763_v63 = vpop.eup %1762  ;;  %v1093_v28 = vmul.f32 %v1761_v61, %v2312_v10  ;;  %v2368_v10 = vld [vmem:[#allocation3 + $0xe0] ss:$16 sps:$4 sm:$0xff]  }
 0xa7a   :  { %1096 = vrot.lane.b32.xlu0 %v1094_v62, %s1888_s2 }
 0xa7d   :  { %v1765_v0 = vpop.eup %1764 }
 0xa7e   :  { %v1125_v2 = vmul.f32 %v1765_v0, %v1763_v63  ;;  %v1124_v3 = vmul.f32 %v1765_v0, %v2307_v17 }
 0xa80   :  { %1127 = vrot.lane.b32.xlu1 %v1125_v2, %s1888_s2 }
 0xa84   :  { %1133 = vrot.lane.b32.xlu1 %v1765_v0, %s1888_s2 }
 0xaec   :  { %v1097_v9 = vpop.permute.xlu0 %1096 }
 0xaed   :  { %v2364_v30 = vadd.f32 %v1097_v9, %v1093_v28 }
 0xaf2   :  { %v1128_v7 = vpop.permute.xlu1 %1127 }
 0xaf3   :  { %v2359_v8 = vadd.f32 %v1128_v7, %v1124_v3 }
 0xaf5   :  { %1766 = vtanh.f32 %v2359_v8 }
 0xaf6   :  { %1768 = vpow2.f32 %v1599_v12  ;;  %v1134_v16 = vpop.permute.xlu1 %1133 }
 0xaf7   :  { %1770 = vtanh.f32 %v2364_v30  ;;  %v1135_v15 = vrot.slane %v1134_v16, 2 }
 0xb02   :  { %v1767_v11 = vpop.eup %1766 }
 0xb03   :  { %1138 = vrot.lane.b32.xlu0 %v1767_v11, %s1888_s2  ;;  %v1769_v25 = vpop.eup %1768  ;;  %v2420_v11 = vrot.slane %v157_v32, %v1961_v21 }
 0xb04   :  { %v1087_v14 = vadd.f32 1.0, %v1769_v25  ;;  %v1771_v34 = vpop.eup %1770 }
 0xb06   :  { %1772 = vrcp.f32 %v1087_v14 }
 0xb13   :  { %v1773_v17 = vpop.eup %1772 }
 0xb14   :  { %v1101_v35 = vmul.f32 %v1773_v17, %v1771_v34 }
 0xb75   :  { %v1139_v33 = vpop.permute.xlu0 %1138 }
 0xb76   :  { %v1141_v4 = vmul.f32 %v1139_v33, %v1135_v15 }
 0xb78   :  { %v1142_v5 = vsel %vm209_vm2, %v1141_v4, %v1101_v35 }
 0xb79   :  { %v1143_v19 = vpack.c.bf16 %v1142_v5, %v1142_v5 }
 0xb7b   :  { %1177 = vmatmul.mubr.bf16.vlgmr.msra.gmra.mxu1 %v1143_v19  ;;  %1218 = vmatmul.mubr.bf16.vlgmr.msra.gmra.mxu0 %v1143_v19 }
 0xb7c   :  { %1293 = vmatpush1.bf16.msra.mxu1 %v2368_v10  ;;  %1334 = vmatpush1.bf16.msra.mxu0 %v1831_v20 }
 0xb7d   :  { %1294 = vmatprep.subr.bf16.mxu1 %v2371_v6  ;;  %1335 = vmatprep.subr.bf16.mxu0 %v1833_v13 }
 0xb7e   :  { %1324 = vmatprep.mubr.bf16.mxu1 %v1886_v1  ;;  %1365 = vmatprep.mubr.bf16.mxu0 %v1886_v1 }
 0xb80   :  { %1295 = vmatpush1.bf16.msra.mxu1 %v2376_v38  ;;  %1336 = vmatpush1.bf16.msra.mxu0 %v1835_v23 }
 0xb81   :  { %1296 = vmatprep.subr.bf16.mxu1 %v2379_v27  ;;  %1337 = vmatprep.subr.bf16.mxu0 %v1837_v37 }
 0xb84   :  { %1297 = vmatpush1.bf16.msra.mxu1 %v2382_v31  ;;  %1338 = vmatpush1.bf16.msra.mxu0 %v1839_v22 }
 0xb85   :  { %1298 = vmatprep.subr.bf16.mxu1 %v2385_v36  ;;  %1339 = vmatprep.subr.bf16.mxu0 %v1841_v41 }
 0xb88   :  { %1299 = vmatpush1.bf16.msra.mxu1 %v2388_v42  ;;  %1340 = vmatpush1.bf16.msra.mxu0 %v1843_v43 }
 0xb89   :  { %1300 = vmatprep.subr.bf16.mxu1 %v2391_v44  ;;  %1341 = vmatprep.subr.bf16.mxu0 %v1845_v45 }
 0xb8c   :  { %1301 = vmatpush1.bf16.msra.mxu1 %v2394_v46  ;;  %1342 = vmatpush1.bf16.msra.mxu0 %v1847_v47 }
 0xb8d   :  { %1302 = vmatprep.subr.bf16.mxu1 %v2397_v48  ;;  %1343 = vmatprep.subr.bf16.mxu0 %v1849_v49 }
 0xb90   :  { %1303 = vmatpush1.bf16.msra.mxu1 %v2400_v50  ;;  %1344 = vmatpush1.bf16.msra.mxu0 %v1851_v51 }
 0xb91   :  { %1304 = vmatprep.subr.bf16.mxu1 %v2403_v52  ;;  %1345 = vmatprep.subr.bf16.mxu0 %v1853_v39 }
 0xb94   :  { %1305 = vmatpush1.bf16.msra.mxu1 %v2406_v53  ;;  %1346 = vmatpush1.bf16.msra.mxu0 %v1855_v40 }
 0xb95   :  { %1306 = vmatprep.subr.bf16.mxu1 %v2409_v54  ;;  %1347 = vmatprep.subr.bf16.mxu0 %v1857_v55 }
 0xb98   :  { %1307 = vmatpush1.bf16.msra.mxu1 %v2412_v56  ;;  %1348 = vmatpush1.bf16.msra.mxu0 %v1859_v57 }
 0xb99   :  { %1440 = vmatprep.subr.bf16.mxu1 %v1860_v58 }
 0xc3b   :  { %v1178_v59 = vpop.f32.mrf.mxu1  ;;  %v1219_v60 = vpop.f32.mrf.mxu0 }
 0xc3c   :  { %v1226_v61 = vadd.f32 %v1178_v59, %v2127_v24 }
 0xc3d   :  { %v1180_v62 = vpop.f32.mrf.mxu1  ;;  %v1221_v63 = vpop.f32.mrf.mxu0 }
 0xc3e   :  { %v1601_v0 = vmul.f32 -1.442695, %v1226_v61  ;;  %v1252_v2 = vcombine.low %v1219_v60, %v1221_v63  ;;  %v1227_v16 = vadd.f32 %v1180_v62, %v2135_v18 }
 0xc3f   :  { %v1182_v3 = vpop.f32.mrf.mxu1  ;;  %v1223_v7 = vpop.f32.mrf.mxu0 }
 0xc40   :  { %1774 = vpow2.f32 %v1601_v0  ;;  %v1259_v12 = vrot.slane %v1252_v2, %v1961_v21  ;;  %v1602_v22 = vmul.f32 -1.442695, %v1227_v16 }
 0xc41   :  { %v1183_v9 = vpop.f32.mrf.mxu1  ;;  %v1224_v28 = vpop.f32.mrf.mxu0 }
 0xc42   :  { %v1261_v25 = vadd.f32 %v1259_v12, %v2420_v11 }
 0xc44   :  { %v1603_v14 = vmul.f32 -1.442695, %v1261_v25  ;;  %v1269_v17 = vrot.slane %v1261_v25, 2 }
 0xc46   :  { %1776 = vpow2.f32 %v1603_v14 }
 0xc47   :  { %1778 = vtanh.f32 %v1227_v16 }
 0xc4d   :  { %v1775_v34 = vpop.eup %1774 }
 0xc4e   :  { %v1234_v15 = vadd.f32 1.0, %v1775_v34 }
 0xc50   :  { %1780 = vrcp.f32 %v1234_v15 }
 0xc51   :  { %1782 = vtanh.f32 %v1269_v17 }
 0xc53   :  { %v1777_v33 = vpop.eup %1776 }
 0xc54   :  { %v1265_v26 = vadd.f32 1.0, %v1777_v33  ;;  %v1779_v29 = vpop.eup %1778 }
 0xc56   :  { %1784 = vrcp.f32 %v1265_v26 }
 0xc5d   :  { %v1781_v32 = vpop.eup %1780 }
 0xc5e   :  { %v1242_v35 = vmul.f32 %v1781_v32, %v1779_v29  ;;  %v1783_v4 = vpop.eup %1782  ;;  %v1241_v43 = vmul.f32 %v1781_v32, %v2364_v30 }
 0xc60   :  { %1244 = vrot.lane.b32.xlu0 %v1242_v35, %s1888_s2 }
 0xc63   :  { %v1785_v5 = vpop.eup %1784 }
 0xc64   :  { %v1273_v19 = vmul.f32 %v1785_v5, %v1783_v4  ;;  %v1272_v20 = vmul.f32 %v1785_v5, %v2359_v8 }
 0xc66   :  { %1275 = vrot.lane.b32.xlu1 %v1273_v19, %s1888_s2 }
 0xc6a   :  { %1281 = vrot.lane.b32.xlu1 %v1785_v5, %s1888_s2 }
 0xcd2   :  { %v1245_v41 = vpop.permute.xlu0 %1244 }
 0xcd3   :  { %v2434_v47 = vadd.f32 %v1245_v41, %v1241_v43 }
 0xcd8   :  { %v1276_v13 = vpop.permute.xlu1 %1275 }
 0xcd9   :  { %v2429_v23 = vadd.f32 %v1276_v13, %v1272_v20 }
 0xcdb   :  { %1786 = vtanh.f32 %v2429_v23 }
 0xcdc   :  { %1788 = vpow2.f32 %v1602_v22  ;;  %v1282_v8 = vpop.permute.xlu1 %1281 }
 0xcdd   :  { %1790 = vtanh.f32 %v2434_v47  ;;  %v1283_v39 = vrot.slane %v1282_v8, 2 }
 0xce8   :  { %v1787_v37 = vpop.eup %1786 }
 0xce9   :  { %1286 = vrot.lane.b32.xlu0 %v1787_v37, %s1888_s2  ;;  %v1789_v45 = vpop.eup %1788  ;;  %v1609_v37 = vld [vmem:[%s2482_s5] ss:$0 sm:$0xff] }
 0xcea   :  { %v1235_v49 = vadd.f32 1.0, %v1789_v45  ;;  %v1791_v51 = vpop.eup %1790 }
 0xcec   :  { %1792 = vrcp.f32 %v1235_v49 }
 0xcf9   :  { %v1793_v40 = vpop.eup %1792 }
 0xcfa   :  { %v1249_v57 = vmul.f32 %v1793_v40, %v1791_v51 }
 0xd5b   :  { %v1287_v55 = vpop.permute.xlu0 %1286 }
 0xd5c   :  { %v1289_v58 = vmul.f32 %v1287_v55, %v1283_v39 }
 0xd5e   :  { %v1290_v59 = vsel %vm209_vm2, %v1289_v58, %v1249_v57 }
 0xd5f   :  { %v1291_v60 = vpack.c.bf16 %v1290_v59, %v1290_v59 }
 0xd61   :  { %1325 = vmatmul.mubr.bf16.vlgmr.msra.gmra.mxu1 %v1291_v60  ;;  %1366 = vmatmul.mubr.bf16.vlgmr.msra.gmra.mxu0 %v1291_v60 }
 0xd62   :  { %1441 = vmatpush1.bf16.msra.mxu1 %v2368_v10  ;;  %1472 = vmatprep.mubr.bf16.mxu1 %v1886_v1 }
 0xd63   :  { %1442 = vmatprep.subr.bf16.mxu1 %v2371_v6 }
 0xd66   :  { %1443 = vmatpush1.bf16.msra.mxu1 %v2376_v38 }
 0xd67   :  { %1444 = vmatprep.subr.bf16.mxu1 %v2379_v27 }
 0xd6a   :  { %1445 = vmatpush1.bf16.msra.mxu1 %v2382_v31 }
 0xd6b   :  { %1446 = vmatprep.subr.bf16.mxu1 %v2385_v36 }
 0xd6e   :  { %1447 = vmatpush1.bf16.msra.mxu1 %v2388_v42 }
 0xd6f   :  { %1448 = vmatprep.subr.bf16.mxu1 %v2391_v44  ;;  %v173_v44 = vcombine.high %v2420_v11, %v2420_v11 }
 0xd72   :  { %1449 = vmatpush1.bf16.msra.mxu1 %v2394_v46 }
 0xd73   :  { %1450 = vmatprep.subr.bf16.mxu1 %v2397_v48 }
 0xd76   :  { %1451 = vmatpush1.bf16.msra.mxu1 %v2400_v50 }
 0xd77   :  { %1452 = vmatprep.subr.bf16.mxu1 %v2403_v52 }
 0xd7a   :  { %1453 = vmatpush1.bf16.msra.mxu1 %v2406_v53 }
 0xd7b   :  { %1454 = vmatprep.subr.bf16.mxu1 %v2409_v54 }
 0xd7e   :  { %1455 = vmatpush1.bf16.msra.mxu1 %v2412_v56 }
 0xe21   :  { %v1326_v1 = vpop.f32.mrf.mxu1  ;;  %v1367_v30 = vpop.f32.mrf.mxu0 }
 0xe22   :  { %v1374_v10 = vadd.f32 %v1326_v1, %v2127_v24 }
 0xe23   :  { %v1328_v6 = vpop.f32.mrf.mxu1  ;;  %v1369_v38 = vpop.f32.mrf.mxu0 }
 0xe24   :  { %v1604_v27 = vmul.f32 -1.442695, %v1374_v10  ;;  %v1400_v31 = vcombine.low %v1367_v30, %v1369_v38  ;;  %v1375_v54 = vadd.f32 %v1328_v6, %v2135_v18 }
 0xe25   :  { %v1330_v36 = vpop.f32.mrf.mxu1  ;;  %v1371_v42 = vpop.f32.mrf.mxu0 }
 0xe26   :  { %1794 = vpow2.f32 %v1604_v27  ;;  %v1407_v46 = vrot.slane %v1400_v31, %v1961_v21  ;;  %v1605_v16 = vmul.f32 -1.442695, %v1375_v54  ;;  %v1610_v42 = vld [vmem:[#allocation2] ss:$0 sm:$0xff] }
 0xe27   :  { %v1331_v48 = vpop.f32.mrf.mxu1  ;;  %v1372_v50 = vpop.f32.mrf.mxu0 }
 0xe28   :  { %v1409_v52 = vadd.f32 %v1407_v46, %v173_v44 }
 0xe2a   :  { %v1606_v53 = vmul.f32 -1.442695, %v1409_v52  ;;  %v1417_v62 = vrot.slane %v1409_v52, 2 }
 0xe2c   :  { %1796 = vpow2.f32 %v1606_v53 }
 0xe2d   :  { %1798 = vtanh.f32 %v1375_v54 }
 0xe33   :  { %v1795_v56 = vpop.eup %1794 }
 0xe34   :  { %v1382_v61 = vadd.f32 1.0, %v1795_v56 }
 0xe36   :  { %1800 = vrcp.f32 %v1382_v61 }
 0xe37   :  { %1802 = vtanh.f32 %v1417_v62 }
 0xe39   :  { %v1797_v63 = vpop.eup %1796 }
 0xe3a   :  { %v1413_v0 = vadd.f32 1.0, %v1797_v63  ;;  %v1799_v2 = vpop.eup %1798 }
 0xe3c   :  { %1804 = vrcp.f32 %v1413_v0 }
 0xe43   :  { %v1801_v3 = vpop.eup %1800 }
 0xe44   :  { %v1390_v7 = vmul.f32 %v1801_v3, %v1799_v2  ;;  %v1803_v21 = vpop.eup %1802  ;;  %v1389_v15 = vmul.f32 %v1801_v3, %v2434_v47 }
 0xe46   :  { %1392 = vrot.lane.b32.xlu0 %v1390_v7, %s1888_s2 }
 0xe49   :  { %v1805_v11 = vpop.eup %1804 }
 0xe4a   :  { %v1421_v12 = vmul.f32 %v1805_v11, %v1803_v21  ;;  %v1420_v9 = vmul.f32 %v1805_v11, %v2429_v23 }
 0xe4c   :  { %1423 = vrot.lane.b32.xlu1 %v1421_v12, %s1888_s2 }
 0xe50   :  { %1429 = vrot.lane.b32.xlu1 %v1805_v11, %s1888_s2 }
 0xeb8   :  { %v1393_v34 = vpop.permute.xlu0 %1392 }
 0xeb9   :  { %v1395_v33 = vadd.f32 %v1393_v34, %v1389_v15 }
 0xebe   :  { %v1424_v28 = vpop.permute.xlu1 %1423 }
 0xebf   :  { %v1426_v25 = vadd.f32 %v1424_v28, %v1420_v9 }
 0xec1   :  { %1806 = vtanh.f32 %v1426_v25 }
 0xec2   :  { %1808 = vpow2.f32 %v1605_v16  ;;  %v1430_v29 = vpop.permute.xlu1 %1429 }
 0xec3   :  { %1810 = vtanh.f32 %v1395_v33  ;;  %v1431_v35 = vrot.slane %v1430_v29, 2 }
 0xece   :  { %v1807_v14 = vpop.eup %1806 }
 0xecf   :  { %1434 = vrot.lane.b32.xlu0 %v1807_v14, %s1888_s2  ;;  %v1809_v17 = vpop.eup %1808 }
 0xed0   :  { %v1383_v26 = vadd.f32 1.0, %v1809_v17  ;;  %v1811_v32 = vpop.eup %1810 }
 0xed2   :  { %1812 = vrcp.f32 %v1383_v26 }
 0xed3   :  { %1511 = vrot.lane.b32.xlu0 %v1609_v37, %s1888_s2 }
 0xedf   :  { %v1813_v4 = vpop.eup %1812 }
 0xee0   :  { %v1397_v19 = vmul.f32 %v1813_v4, %v1811_v32 }
 0xf41   :  { %v1435_v5 = vpop.permute.xlu0 %1434 }
 0xf42   :  { %v1437_v20 = vmul.f32 %v1435_v5, %v1431_v35 }
 0xf44   :  { %v1438_v13 = vsel %vm209_vm2, %v1437_v20, %v1397_v19 }
 0xf45   :  { %v1439_v23 = vpack.c.bf16 %v1438_v13, %v1438_v13  ;;  %v1512_v6 = vpop.permute.xlu0 %1511 }
 0xf47   :  { %1473 = vmatmul.mubr.bf16.vlgmr.msra.gmra.mxu1 %v1439_v23 }
0x1007   :  { %v1474_v22 = vpop.f32.mrf.mxu1 }
0x1008   :  { %v1481_v41 = vadd.f32 %v1474_v22, %v2127_v24 }
0x1009   :  { %v1476_v43 = vpop.f32.mrf.mxu1 }
0x100a   :  { %v1607_v45 = vmul.f32 -1.442695, %v1481_v41  ;;  %v1482_v8 = vadd.f32 %v1476_v43, %v2135_v18 }
0x100b   :  { %v1478_v47 = vpop.f32.mrf.mxu1 }
0x100c   :  { %1814 = vpow2.f32 %v1607_v45  ;;  %v1608_v58 = vmul.f32 -1.442695, %v1482_v8 }
0x100d   :  { %v1479_v49 = vpop.f32.mrf.mxu1  ;;  %1816 = vtanh.f32 %v1482_v8 }
0x1019   :  { %v1815_v51 = vpop.eup %1814 }
0x101a   :  { %v1489_v39 = vadd.f32 1.0, %v1815_v51  ;;  %v1817_v40 = vpop.eup %1816 }
0x101c   :  { %1818 = vrcp.f32 %v1489_v39 }
0x101d   :  { %1820 = vpow2.f32 %v1608_v58 }
0x1029   :  { %v1819_v55 = vpop.eup %1818 }
0x102a   :  { %v1497_v57 = vmul.f32 %v1819_v55, %v1817_v40  ;;  %v1821_v59 = vpop.eup %1820  ;;  %v1496_v60 = vmul.f32 %v1819_v55, %v1395_v33 }
0x102b   :  { %v1490_v24 = vadd.f32 1.0, %v1821_v59 }
0x102c   :  { %1499 = vrot.lane.b32.xlu1 %v1497_v57, %s1888_s2 }
0x102d   :  { %1822 = vrcp.f32 %v1490_v24 }
0x103a   :  { %v1823_v10 = vpop.eup %1822 }
0x109e   :  { %v1500_v1 = vpop.permute.xlu1 %1499 }
0x109f   :  { %v1502_v30 = vadd.f32 %v1500_v1, %v1496_v60 }
0x10a1   :  { %1824 = vtanh.f32 %v1502_v30 }
0x10ae   :  { %v1825_v18 = vpop.eup %1824 }
0x10af   :  { %v1504_v38 = vmul.f32 %v1825_v18, %v1823_v10 }
0x10b1   :  { %v1514_v27 = vmul.f32 %v1512_v6, %v1504_v38 }
0x10b3   :  { %1516 = vrot.lane.b32.xlu1 %v1514_v27, %s1888_s2 }
0x1125   :  { %v1517_v31 = vpop.permute.xlu1 %1516 }
0x1126   :  { %v1520_v36 = vsel %vm1519_vm4, %v1517_v31, 0.0 }
0x1127   :  { %1521 = vadd.xlane.f32.xlu0 %v1520_v36 }
0x11b0   :  { %v1522_v44 = vpop.xlane.xlu0 %1521 }
0x11b1   :  { %v1530_v46 = vadd.f32 %v1610_v42, %v1522_v44 }
0x11b3   :  { %v1611_v48 = vmul.f32 -1.442695, %v1530_v46 }
0x11b5   :  { %1826 = vpow2.f32 %v1611_v48 }
0x11c2   :  { %v1827_v50 = vpop.eup %1826 }
0x11c3   :  { %v1534_v52 = vadd.f32 1.0, %v1827_v50 }
0x11c5   :  { %1828 = vrcp.f32 %v1534_v52 }
0x11d2   :  { %v1829_v53 = vpop.eup %1828 }
0x11d3   :  { %1538 = vst.msk [vmem:[%s2484_s7] sm:$0x3] %vm1537_vm5, %v1829_v53 }
0x11d4   :  { %1543 = vsyncpa [#allocation4], 1 }

</bundles_post_ra>
